<compile_context>
chip_gen: v6e
topology: v6e:2x2x1
jax: 0.10.0
libtpu: 0.0.40
codegen_flags: <defaults>
</compile_context>

<pallas_src>
import functools

import jax
import jax.numpy as jnp
from jax.experimental import pallas as pl
from jax.experimental.pallas import tpu as pltpu

# ---- demo shapes / tiling constants (small but tiling-meaningful) ----
N_NODES = 512
F_IN = 16                 # raw feature width of the toy graph
F_PAD = 128               # zero-padded feature width (lane-dense vregs / MXU columns)
HIDDEN = 128              # matches hidden_size in the reference module
N_SUB = 32
N_GRAPHS = 4
TILE_N = 256              # node-row tile -> 2 row tiles (one per v7x TensorCore)
NODES_PER_SUB = N_NODES // N_SUB          # 16 (contiguous chunk per subgraph)
SUBS_PER_TILE = TILE_N // NODES_PER_SUB   # 16 subgraphs produced per row tile


def sage_score_kernel(a_ref, xall_ref, xi_ref, wself_ref, wneigh_ref, bgnn_ref,
                      w1_ref, b1_ref, w2_ref, b2_ref,
                      out_ref, *, subs_per_tile, nodes_per_sub):
    """Grid = (row_tiles,) ["parallel"].  One full-K MXU pass per row tile."""
    # Mean-neighbor aggregation for this row tile: A[tile, :] @ x  (bf16 in, f32 acc).
    agg = jnp.dot(a_ref[...], xall_ref[...],
                  preferred_element_type=jnp.float32)                    # [TILE_N, F_PAD]

    # GraphSAGE linear as two dots (no lane-axis concat): x@W_self + agg@W_neigh + b.
    h = (jnp.dot(xi_ref[...], wself_ref[...],
                 preferred_element_type=jnp.float32)
         + jnp.dot(agg.astype(jnp.bfloat16), wneigh_ref[...],
                   preferred_element_type=jnp.float32)
         + bgnn_ref[...])                                                # [TILE_N, H]
    h = jnp.maximum(h, 0.0)

    # Per-subgraph mean pooling over contiguous equal-size chunks (pure VPU/XLU,
    # no dense [S, N] pooling matrix).
    emb = jnp.mean(
        h.reshape(subs_per_tile, nodes_per_sub, h.shape[-1]), axis=1)    # [S_t, H]

    # Output MLP: Linear -> LeakyReLU(0.01) -> Linear(H, 1).
    z = jnp.dot(emb.astype(jnp.bfloat16), w1_ref[...],
                preferred_element_type=jnp.float32) + b1_ref[...]
    z = jnp.where(z > 0, z, 0.01 * z)
    score = jnp.dot(z.astype(jnp.bfloat16), w2_ref[...],
                    preferred_element_type=jnp.float32) + b2_ref[...]    # [S_t, 1]

    out_ref[...] = score


def net_forward(x, a_norm, batch_mat, weights, params,
                *, tile_n=TILE_N, nodes_per_sub=NODES_PER_SUB, f_pad=F_PAD):
    n_nodes, f_in = x.shape
    n_sub = weights.shape[0]
    hidden = params["w_self"].shape[1]
    subs_per_tile = tile_n // nodes_per_sub

    assert n_nodes % tile_n == 0
    assert tile_n % nodes_per_sub == 0 and subs_per_tile % 8 == 0
    assert n_sub * nodes_per_sub == n_nodes
    assert f_in <= f_pad

    # Zero-pad the feature axis so x / the A@x result are lane-dense (128 lanes).
    pad = f_pad - f_in
    x_pad = jnp.pad(x, ((0, 0), (0, pad)))
    w_self_pad = jnp.pad(params["w_self"], ((0, pad), (0, 0)))
    w_neigh_pad = jnp.pad(params["w_neigh"], ((0, pad), (0, 0)))

    # bf16 matmul operands (f32 accumulation inside the kernel).
    x_bf = x_pad.astype(jnp.bfloat16)
    a_bf = a_norm.astype(jnp.bfloat16)
    wself_bf = w_self_pad.astype(jnp.bfloat16)
    wneigh_bf = w_neigh_pad.astype(jnp.bfloat16)
    w1_bf = params["w1"].astype(jnp.bfloat16)
    w2_bf = params["w2"].astype(jnp.bfloat16)

    kernel = functools.partial(sage_score_kernel,
                               subs_per_tile=subs_per_tile,
                               nodes_per_sub=nodes_per_sub)

    # Stage 1 (Pallas): tiled GraphSAGE + subgraph mean-pool + MLP -> per-subgraph score.
    scores = pl.pallas_call(
        kernel,
        out_shape=jax.ShapeDtypeStruct((n_sub, 1), jnp.float32),
        grid_spec=pltpu.PrefetchScalarGridSpec(
            num_scalar_prefetch=0,
            grid=(n_nodes // tile_n,),
            in_specs=[
                pl.BlockSpec((tile_n, n_nodes), lambda i: (i, 0)),   # A row tile (full K)
                pl.BlockSpec((n_nodes, f_pad), lambda i: (0, 0)),    # all x rows (resident)
                pl.BlockSpec((tile_n, f_pad), lambda i: (i, 0)),     # x rows (self term)
                pl.BlockSpec((f_pad, hidden), lambda i: (0, 0)),     # W_self (resident)
                pl.BlockSpec((f_pad, hidden), lambda i: (0, 0)),     # W_neigh (resident)
                pl.BlockSpec((1, hidden), lambda i: (0, 0)),         # GNN bias
                pl.BlockSpec((hidden, hidden), lambda i: (0, 0)),    # MLP w1
                pl.BlockSpec((1, hidden), lambda i: (0, 0)),         # MLP b1
                pl.BlockSpec((hidden, 1), lambda i: (0, 0)),         # MLP w2
                pl.BlockSpec((1, 1), lambda i: (0, 0)),              # MLP b2
            ],
            out_specs=pl.BlockSpec((subs_per_tile, 1), lambda i: (i, 0)),
        ),
        compiler_params=pltpu.CompilerParams(
            dimension_semantics=("parallel",),
            vmem_limit_bytes=32 * 1024 * 1024,
        ),
    )(a_bf, x_bf, x_bf, wself_bf, wneigh_bf, params["b_gnn"],
      w1_bf, params["b1"], w2_bf, params["b2"])

    # Stage 2 (plain JAX): tiny graph add-pool + exact normalization (~256 FLOPs --
    # a dedicated kernel here is pure dispatch/DMA overhead).
    sw = scores * weights
    energy = batch_mat @ sw
    norm = batch_mat @ weights
    return energy / norm


def make_params(key, f_in, hidden):
    ks = jax.random.split(key, 6)
    scale_in = 1.0 / jnp.sqrt(f_in)
    scale_h = 1.0 / jnp.sqrt(hidden)
    return {
        "w_self":  jax.random.normal(ks[0], (f_in, hidden), jnp.float32) * scale_in,
        "w_neigh": jax.random.normal(ks[1], (f_in, hidden), jnp.float32) * scale_in,
        "b_gnn":   jnp.zeros((1, hidden), jnp.float32),
        "w1":      jax.random.normal(ks[2], (hidden, hidden), jnp.float32) * scale_h,
        "b1":      jax.random.normal(ks[3], (1, hidden), jnp.float32) * 0.01,
        "w2":      jax.random.normal(ks[4], (hidden, 1), jnp.float32) * scale_h,
        "b2":      jax.random.normal(ks[5], (1, 1), jnp.float32) * 0.01,
    }


def net_reference(x, a_norm, batch_mat, weights, params, nodes_per_sub):
    """Pure-JAX f32 reference with identical semantics (for tolerance checking)."""
    agg = a_norm @ x
    h = jnp.maximum(x @ params["w_self"] + agg @ params["w_neigh"] + params["b_gnn"], 0.0)
    n_sub = weights.shape[0]
    emb = jnp.mean(h.reshape(n_sub, nodes_per_sub, -1), axis=1)
    z = emb @ params["w1"] + params["b1"]
    z = jnp.where(z > 0, z, 0.01 * z)
    score = z @ params["w2"] + params["b2"]
    energy = batch_mat @ (score * weights)
    norm = batch_mat @ weights
    return energy / norm


if __name__ == "__main__":
    key = jax.random.PRNGKey(0)
    k_x, k_a, k_w, k_p = jax.random.split(key, 4)

    # node features
    x = jax.random.normal(k_x, (N_NODES, F_IN), jnp.float32)

    # mean-neighbor adjacency WITHOUT self-loops (matches PyG SAGEConv mean aggregation);
    # isolated nodes get a zero aggregation (divide by max(deg, 1)).
    adj = (jax.random.uniform(k_a, (N_NODES, N_NODES)) < 0.05).astype(jnp.float32)
    adj = jnp.maximum(adj, adj.T)
    adj = adj * (1.0 - jnp.eye(N_NODES, dtype=jnp.float32))
    deg = jnp.maximum(jnp.sum(adj, axis=1, keepdims=True), 1.0)
    a_norm = adj / deg

    # subgraph -> graph add-pool matrix (subgraphs are contiguous equal-size node chunks)
    g_ids = jnp.repeat(jnp.arange(N_GRAPHS), N_SUB // N_GRAPHS)          # [N_SUB]
    batch_mat = (g_ids[None, :] == jnp.arange(N_GRAPHS)[:, None]).astype(jnp.float32)

    # positive per-subgraph weights (so the norm is never ~0)
    weights = jax.random.uniform(k_w, (N_SUB, 1), jnp.float32, 0.1, 1.0)

    params = make_params(k_p, F_IN, HIDDEN)

    out = net_forward(x, a_norm, batch_mat, weights, params)
    out = jax.block_until_ready(out)

    ref = net_reference(x, a_norm, batch_mat, weights, params, NODES_PER_SUB)
    assert out.shape == (N_GRAPHS, 1)
    assert bool(jnp.all(jnp.isfinite(out)))
    assert bool(jnp.allclose(out, ref, rtol=0.1, atol=0.05)), (out, ref)
    print("KERNEL_OK")
</pallas_src>

<mosaic_0001>
module attributes {stable_mosaic.version = 11 : i64} {
  func.func @sage_score_kernel(%arg0: i32, %arg1: memref<256x512xbf16, #tpu.memory_space<vmem>>, %arg2: memref<512x128xbf16, #tpu.memory_space<vmem>>, %arg3: memref<256x128xbf16, #tpu.memory_space<vmem>>, %arg4: memref<128x128xbf16, #tpu.memory_space<vmem>>, %arg5: memref<128x128xbf16, #tpu.memory_space<vmem>>, %arg6: memref<1x128xf32, #tpu.memory_space<vmem>>, %arg7: memref<128x128xbf16, #tpu.memory_space<vmem>>, %arg8: memref<1x128xf32, #tpu.memory_space<vmem>>, %arg9: memref<128x1xbf16, #tpu.memory_space<vmem>>, %arg10: memref<1x1xf32, #tpu.memory_space<vmem>>, %arg11: memref<16x1xf32, #tpu.memory_space<vmem>>) attributes {dimension_semantics = [#tpu.dimension_semantics<parallel>], iteration_bounds = array<i64: 2>, scalar_prefetch = 0 : i64, scratch_operands = 0 : i64, tpu.core_type = #tpu.core_type<tc>, window_params = [{transform_indices = @transform_0, window_bounds = array<i64: 256, 512>}, {pipeline_mode = #tpu.pipeline_mode<synchronous>, transform_indices = @transform_1, window_bounds = array<i64: 512, 128>}, {transform_indices = @transform_2, window_bounds = array<i64: 256, 128>}, {pipeline_mode = #tpu.pipeline_mode<synchronous>, transform_indices = @transform_3, window_bounds = array<i64: 128, 128>}, {pipeline_mode = #tpu.pipeline_mode<synchronous>, transform_indices = @transform_4, window_bounds = array<i64: 128, 128>}, {pipeline_mode = #tpu.pipeline_mode<synchronous>, transform_indices = @transform_5, window_bounds = array<i64: 1, 128>}, {pipeline_mode = #tpu.pipeline_mode<synchronous>, transform_indices = @transform_6, window_bounds = array<i64: 128, 128>}, {pipeline_mode = #tpu.pipeline_mode<synchronous>, transform_indices = @transform_7, window_bounds = array<i64: 1, 128>}, {pipeline_mode = #tpu.pipeline_mode<synchronous>, transform_indices = @transform_8, window_bounds = array<i64: 128, 1>}, {pipeline_mode = #tpu.pipeline_mode<synchronous>, transform_indices = @transform_9, window_bounds = array<i64: 1, 1>}, {transform_indices = @transform_10, window_bounds = array<i64: 16, 1>}]} {
    %c0 = arith.constant 0 : index
    %c0_0 = arith.constant 0 : index
    %0 = vector.load %arg1[%c0, %c0_0] : memref<256x512xbf16, #tpu.memory_space<vmem>>, vector<256x512xbf16>
    %c0_1 = arith.constant 0 : index
    %c0_2 = arith.constant 0 : index
    %1 = vector.load %arg2[%c0_1, %c0_2] : memref<512x128xbf16, #tpu.memory_space<vmem>>, vector<512x128xbf16>
    %cst = arith.constant dense<0.000000e+00> : vector<256x128xf32>
    %2 = tpu.matmul %0, %1, %cst {dimension_numbers = #tpu.dot_dimension_numbers<[1], [0], [0], [1], [0, 0, 1, 1], [], []>} : vector<256x512xbf16>, vector<512x128xbf16>, vector<256x128xf32> -> vector<256x128xf32>
    %c0_3 = arith.constant 0 : index
    %c0_4 = arith.constant 0 : index
    %3 = vector.load %arg3[%c0_3, %c0_4] : memref<256x128xbf16, #tpu.memory_space<vmem>>, vector<256x128xbf16>
    %c0_5 = arith.constant 0 : index
    %c0_6 = arith.constant 0 : index
    %4 = vector.load %arg4[%c0_5, %c0_6] : memref<128x128xbf16, #tpu.memory_space<vmem>>, vector<128x128xbf16>
    %cst_7 = arith.constant dense<0.000000e+00> : vector<256x128xf32>
    %5 = tpu.matmul %3, %4, %cst_7 {dimension_numbers = #tpu.dot_dimension_numbers<[1], [0], [0], [1], [0, 0, 1, 1], [], []>} : vector<256x128xbf16>, vector<128x128xbf16>, vector<256x128xf32> -> vector<256x128xf32>
    %6 = arith.truncf %2 : vector<256x128xf32> to vector<256x128xbf16>
    %c0_8 = arith.constant 0 : index
    %c0_9 = arith.constant 0 : index
    %7 = vector.load %arg5[%c0_8, %c0_9] : memref<128x128xbf16, #tpu.memory_space<vmem>>, vector<128x128xbf16>
    %cst_10 = arith.constant dense<0.000000e+00> : vector<256x128xf32>
    %8 = tpu.matmul %6, %7, %cst_10 {dimension_numbers = #tpu.dot_dimension_numbers<[1], [0], [0], [1], [0, 0, 1, 1], [], []>} : vector<256x128xbf16>, vector<128x128xbf16>, vector<256x128xf32> -> vector<256x128xf32>
    %9 = arith.addf %5, %8 : vector<256x128xf32>
    %c0_11 = arith.constant 0 : index
    %c0_12 = arith.constant 0 : index
    %10 = vector.load %arg6[%c0_11, %c0_12] : memref<1x128xf32, #tpu.memory_space<vmem>>, vector<1x128xf32>
    %11 = vector.broadcast %10 : vector<1x128xf32> to vector<256x128xf32>
    %12 = arith.addf %9, %11 : vector<256x128xf32>
    %cst_13 = arith.constant 0.000000e+00 : f32
    %13 = vector.broadcast %cst_13 : f32 to vector<256x128xf32>
    %14 = arith.maximumf %12, %13 : vector<256x128xf32>
    %15 = vector.shape_cast %14 : vector<256x128xf32> to vector<16x16x128xf32>
    %cst_14 = arith.constant dense<0.000000e+00> : vector<16x128xf32>
    %16 = vector.multi_reduction <add>, %15, %cst_14 [1] : vector<16x16x128xf32> to vector<16x128xf32>
    %cst_15 = arith.constant 1.600000e+01 : f32
    %17 = vector.broadcast %cst_15 : f32 to vector<16x128xf32>
    %18 = arith.divf %16, %17 : vector<16x128xf32>
    %19 = arith.truncf %18 : vector<16x128xf32> to vector<16x128xbf16>
    %c0_16 = arith.constant 0 : index
    %c0_17 = arith.constant 0 : index
    %20 = vector.load %arg7[%c0_16, %c0_17] : memref<128x128xbf16, #tpu.memory_space<vmem>>, vector<128x128xbf16>
    %cst_18 = arith.constant dense<0.000000e+00> : vector<16x128xf32>
    %21 = tpu.matmul %19, %20, %cst_18 {dimension_numbers = #tpu.dot_dimension_numbers<[1], [0], [0], [1], [0, 0, 1, 1], [], []>} : vector<16x128xbf16>, vector<128x128xbf16>, vector<16x128xf32> -> vector<16x128xf32>
    %c0_19 = arith.constant 0 : index
    %c0_20 = arith.constant 0 : index
    %22 = vector.load %arg8[%c0_19, %c0_20] : memref<1x128xf32, #tpu.memory_space<vmem>>, vector<1x128xf32>
    %23 = vector.broadcast %22 : vector<1x128xf32> to vector<16x128xf32>
    %24 = arith.addf %21, %23 : vector<16x128xf32>
    %cst_21 = arith.constant 0.000000e+00 : f32
    %25 = vector.broadcast %cst_21 : f32 to vector<16x128xf32>
    %26 = arith.cmpf ogt, %24, %25 : vector<16x128xf32>
    %cst_22 = arith.constant 0.00999999977 : f32
    %27 = vector.broadcast %cst_22 : f32 to vector<16x128xf32>
    %28 = arith.mulf %27, %24 : vector<16x128xf32>
    %29 = arith.select %26, %24, %28 : vector<16x128xi1>, vector<16x128xf32>
    %30 = arith.truncf %29 : vector<16x128xf32> to vector<16x128xbf16>
    %c0_23 = arith.constant 0 : index
    %c0_24 = arith.constant 0 : index
    %31 = vector.load %arg9[%c0_23, %c0_24] : memref<128x1xbf16, #tpu.memory_space<vmem>>, vector<128x1xbf16>
    %cst_25 = arith.constant dense<0.000000e+00> : vector<16x1xf32>
    %32 = tpu.matmul %30, %31, %cst_25 {dimension_numbers = #tpu.dot_dimension_numbers<[1], [0], [0], [1], [0, 0, 1, 1], [], []>} : vector<16x128xbf16>, vector<128x1xbf16>, vector<16x1xf32> -> vector<16x1xf32>
    %c0_26 = arith.constant 0 : index
    %c0_27 = arith.constant 0 : index
    %33 = vector.load %arg10[%c0_26, %c0_27] : memref<1x1xf32, #tpu.memory_space<vmem>>, vector<1x1xf32>
    %34 = vector.broadcast %33 : vector<1x1xf32> to vector<16x1xf32>
    %35 = arith.addf %32, %34 : vector<16x1xf32>
    %c0_28 = arith.constant 0 : index
    %c0_29 = arith.constant 0 : index
    %36 = vector.load %arg11[%c0_28, %c0_29] : memref<16x1xf32, #tpu.memory_space<vmem>>, vector<16x1xf32>
    tpu.vector_store %arg11[%c0_28, %c0_29], %35 {strides = array<i32>} : memref<16x1xf32, #tpu.memory_space<vmem>>, vector<16x1xf32>,
    return
  }
  func.func @transform_0(%arg0: i32) -> (i32, i32) {
    %c0_i32 = arith.constant 0 : i32
    %c0_i32_0 = arith.constant 0 : i32
    return %arg0, %c0_i32 : i32, i32
  }
  func.func @transform_1(%arg0: i32) -> (i32, i32) {
    %c0_i32 = arith.constant 0 : i32
    %c0_i32_0 = arith.constant 0 : i32
    %c0_i32_1 = arith.constant 0 : i32
    return %c0_i32, %c0_i32_0 : i32, i32
  }
  func.func @transform_2(%arg0: i32) -> (i32, i32) {
    %c0_i32 = arith.constant 0 : i32
    %c0_i32_0 = arith.constant 0 : i32
    return %arg0, %c0_i32 : i32, i32
  }
  func.func @transform_3(%arg0: i32) -> (i32, i32) {
    %c0_i32 = arith.constant 0 : i32
    %c0_i32_0 = arith.constant 0 : i32
    %c0_i32_1 = arith.constant 0 : i32
    return %c0_i32, %c0_i32_0 : i32, i32
  }
  func.func @transform_4(%arg0: i32) -> (i32, i32) {
    %c0_i32 = arith.constant 0 : i32
    %c0_i32_0 = arith.constant 0 : i32
    %c0_i32_1 = arith.constant 0 : i32
    return %c0_i32, %c0_i32_0 : i32, i32
  }
  func.func @transform_5(%arg0: i32) -> (i32, i32) {
    %c0_i32 = arith.constant 0 : i32
    %c0_i32_0 = arith.constant 0 : i32
    %c0_i32_1 = arith.constant 0 : i32
    return %c0_i32, %c0_i32_0 : i32, i32
  }
  func.func @transform_6(%arg0: i32) -> (i32, i32) {
    %c0_i32 = arith.constant 0 : i32
    %c0_i32_0 = arith.constant 0 : i32
    %c0_i32_1 = arith.constant 0 : i32
    return %c0_i32, %c0_i32_0 : i32, i32
  }
  func.func @transform_7(%arg0: i32) -> (i32, i32) {
    %c0_i32 = arith.constant 0 : i32
    %c0_i32_0 = arith.constant 0 : i32
    %c0_i32_1 = arith.constant 0 : i32
    return %c0_i32, %c0_i32_0 : i32, i32
  }
  func.func @transform_8(%arg0: i32) -> (i32, i32) {
    %c0_i32 = arith.constant 0 : i32
    %c0_i32_0 = arith.constant 0 : i32
    %c0_i32_1 = arith.constant 0 : i32
    return %c0_i32, %c0_i32_0 : i32, i32
  }
  func.func @transform_9(%arg0: i32) -> (i32, i32) {
    %c0_i32 = arith.constant 0 : i32
    %c0_i32_0 = arith.constant 0 : i32
    %c0_i32_1 = arith.constant 0 : i32
    return %c0_i32, %c0_i32_0 : i32, i32
  }
  func.func @transform_10(%arg0: i32) -> (i32, i32) {
    %c0_i32 = arith.constant 0 : i32
    %c0_i32_0 = arith.constant 0 : i32
    return %arg0, %c0_i32 : i32, i32
  }
}

</mosaic_0001>

<bundles_post_ra>
// kernel: tpu_custom_call.1
= control target key start
LH: loop header
LB: loop body
LE: loop exit
PB: predicated region body
PF: predicated region fallthrough
CT: control target
= control target key end

     0   :  { %s4246_s0 = inlined_call_operand.hbm [shape: bf16[512,512], index: 0, kind: input, shape index: {}]   ;;  %s4247_s1 = inlined_call_operand.hbm [shape: bf16[512,128], index: 1, kind: input, shape index: {}]   ;;  %s4248_s2 = inlined_call_operand.hbm [shape: bf16[512,128], index: 2, kind: input, shape index: {}]   ;;  %s4249_s3 = inlined_call_operand.vmem [shape: bf16[128,128], index: 3, kind: input, shape index: {}]   ;;  %s4250_s4 = inlined_call_operand.hbm [shape: bf16[128,128], index: 4, kind: input, shape index: {}]   ;;  %s4251_s5 = inlined_call_operand.vmem [shape: f32[1,128], index: 5, kind: input, shape index: {}]   ;;  %s4252_s6 = inlined_call_operand.hbm [shape: bf16[128,128], index: 6, kind: input, shape index: {}]   ;;  %s4253_s7 = inlined_call_operand.vmem [shape: f32[1,128], index: 7, kind: input, shape index: {}]   ;;  %s4254_s8 = inlined_call_operand.vmem [shape: bf16[128,1], index: 8, kind: input, shape index: {}]   ;;  %s4255_s9 = inlined_call_operand.<no memory space> [shape: f32[1,1], index: 9, kind: input, shape index: {}]   ;;  %s4256_s10 = inlined_call_operand.vmem [shape: f32[32,1], index: 10, kind: output, shape index: {}]  }
   0x1   :  { %4267 = sst [smem:[#allocation17_spill]] %s4246_s0  ;;  %v15_v0 = vstv %s4255_s9 }
   0x2   :  { %4268 = sst [smem:[#allocation18_spill]] %s4256_s10  ;;  %16 = vst [vmem:[#allocation2] sm:$0x1] %v15_v0 }
   0x3   :  { %17 = vsyncpa [#allocation4], 0 }
   0x4   :  { %19 = vsyncpa [#allocation4 + $0x1], 0 }
   0x5   :  { %20 = vsyncpa [#allocation6], 0 }
   0x6   :  { %21 = vsyncpa [#allocation10], 0  ;;  %s3757_s15 = smov 0   ;;  %s3759_s16 = smov 0  }
   0x7   :  { %s3761_s17 = smov 0   ;;  %s3763_s18 = smov 0  }
   0x8 LB: > { %s3776_s9 = sadd.s32 4294967295, %s3686_s18   ;;  %p47_p0 = scmp.ne.s32.totalorder %s3678_s16, %s3674_s15  ;;  %s3686_s18 = sphi %s3763_s18, %s4288_s18   ;;  %s3682_s17 = sphi %s3761_s17, %s4291_s17   ;;  %s3678_s16 = sphi %s3759_s16, %s4290_s16   ;;  %s3674_s15 = sphi %s3757_s15, %s4289_s15  }
   0x9   : > { %p4259_p1 = scmp.eq.s32.totalorder %s3776_s9, 0  ;;  %p2647_p2 = scmp.ge.s32.totalorder %s3686_s18, 1 }
   0xa   : > { %p278_p3 = scmp.lt.s32.totalorder %s3686_s18, 3  ;;  %s3688_s21 = smov [#allocation5]  }
   0xb   : > { %p3784_p4 = por %p4259_p1, %p47_p0  ;;  %s290_s22 = sshll.u32 %s3688_s21, 4  ;;  %s291_s22 = int_to_ptr.vmem [resolvable:$true] %s290_s22 }
   0xc   : > { %p3788_p5 = pnand %p2647_p2, %p278_p3  ;;  %s3801_s24 = sadd.s32 1, %s3686_s18  }
   0xd   : > { %s4269_s19 = scalar_select %p3784_p4, 1, 0 }
   0xe   : > { %s4270_s20 = scalar_select %p3788_p5, 1, 0 }
   0xf   : > { %p3261_p6 = pneg %p3788_p5  ;;  %4272 = sst [smem:[#allocation16_spill]] %s3801_s24 }
  0x10   : > { %s34_s25 = sadd.s32 1, %s3682_s17  ;;  %s31_s26 = ssub.s32 %s3686_s18, %s3801_s24 }
  0x11   : > { %p3796_p7 = pnand %p3261_p6, %p4259_p1  ;;  %s3513_s27 = scalar_lea.vmem %s291_s22, 4096 }
  0x12   : > { %p3514_p9 = scmp.ne.s32.totalorder %s291_s22, %s3513_s27  ;;  %p3521_p12 = scmp.lt.s32.totalorder %s291_s22, %s291_s22 }
  0x13   : > { %p4262_p8 = pneg %p3796_p7  ;;  %p3522_p13 = scmp.lt.s32.totalorder %s3513_s27, %s3513_s27 }
  0x15   : > { %p3516_p10 = pnand %p3514_p9, %p4262_p8  ;;  %p3523_p0 = por %p3522_p13, %p3521_p12 }
  0x17   : > { %p3517_p11 = pneg %p3516_p10 }
  0x19   : > { %p3524_p2 = pnand %p3523_p0, %p3517_p11 }
  0x1b   : > { %3527 = shalt.err (!%p3524_p2)
}
  0x1c   : > { %s4260_s28 = smov 64   ;;  %s4265_s29 = smov 4  }
  0x1d   : > { %3264 = dma.hbm_to_vmem [thread:$0]  (!%p3796_p7), %s4247_s1, 4096, %s291_s22, [#allocation6], %s4260_s28, %s4260_s28, %s4265_s29  }
  0x1e   : > { %p32_p3 = scmp.eq.s32.totalorder %s31_s26, 0  ;;  %p41_p6 = scmp.ne.s32.totalorder %s3682_s17, %s3678_s16 }
  0x1f   : > { %p42_p9 = scmp.eq.s32.totalorder %s3686_s18, 0  ;;  %p3281_p10 = scmp.lt.s32.totalorder %s3686_s18, 2 }
  0x20   : > { %s3824_s12 = scalar_select %p32_p3, %s3682_s17, %s34_s25  }
  0x21   : > { %p43_p11 = por %p42_p9, %p41_p6  ;;  %s345_s13 = sand.u32 1, %s3686_s18  }
  0x22   : > { %s347_s14 = sand.u32 1, %s3682_s17   ;;  %s2817_s21 = sshll.u32 %s3686_s18, 13 }
  0x23   : > { %s2652_s15 = sshll.u32 %s347_s14, 9  ;;  %s4273_s0 = sld [smem:[#allocation17_spill]] }
  0x24   : > { %s349_s22 = scalar_lea.vmem [#allocation3], %s2652_s15  ;;  %p3836_p12 = pnand %p3281_p10, %p43_p11 }
  0x25   : > { %s357_s26 = sshll.u32 %s349_s22, 4  ;;  %s3842_s25 = scalar_lea.sflag [#allocation4], %s345_s13  ;;  %s3840_s26 = int_to_ptr.vmem [resolvable:$true] %s357_s26 }
  0x26   : > { %p3530_p0 = pneg %p3836_p12 }
  0x29   : > { %s3834_s10 = scalar_lea.hbm %s4273_s0, %s2817_s21  ;;  %s3533_s21 = scalar_lea.hbm %s4273_s0, 16384 }
  0x2a   : > { %s3528_s11 = scalar_lea.hbm %s3834_s10, 8192  ;;  %p3534_p6 = scmp.lt.s32.totalorder %s3834_s10, %s4273_s0 }
  0x2b   : > { %p3529_p13 = scmp.ne.s32.totalorder %s3834_s10, %s3528_s11  ;;  %p3535_p9 = scmp.lt.s32.totalorder %s3533_s21, %s3528_s11 }
  0x2d   : > { %p3531_p2 = pnand %p3530_p0, %p3529_p13  ;;  %p3536_p10 = por %p3535_p9, %p3534_p6 }
  0x2f   : > { %p3532_p3 = pneg %p3531_p2 }
  0x31   : > { %p3537_p11 = pnand %p3536_p10, %p3532_p3 }
  0x33   : > { %3540 = shalt.err (!%p3537_p11)
}
  0x34   : > { %s3541_s13 = scalar_lea.vmem %s3840_s26, 8192  ;;  %s3691_s24 = smov [#allocation3]  }
  0x35   : > { %p3542_p1 = scmp.ne.s32.totalorder %s3840_s26, %s3541_s13  ;;  %s3546_s15 = sshll.u32 %s3691_s24, 4  ;;  %s3547_s15 = int_to_ptr.vmem [resolvable:$false] %s3546_s15 }
  0x36   : > { %s3548_s28 = scalar_lea.vmem %s3547_s15, 16384  ;;  %p3549_p8 = scmp.lt.s32.totalorder %s3840_s26, %s3547_s15 }
  0x37   : > { %p3544_p13 = pnand %p3542_p1, %p3530_p0  ;;  %p3550_p4 = scmp.lt.s32.totalorder %s3548_s28, %s3541_s13 }
  0x39   : > { %p3545_p2 = pneg %p3544_p13  ;;  %p3551_p5 = por %p3550_p4, %p3549_p8 }
  0x3b   : > { %p3552_p6 = pnand %p3551_p5, %p3545_p2 }
  0x3d   : > { %3555 = shalt.err (!%p3552_p6)
}
  0x3e   : > { %s3692_s11 = smov 256   ;;  %s3693_s21 = smov 16  }
  0x3f   : > { %3274 = dma.hbm_to_vmem [thread:$0]  (!%p3836_p12), %s3834_s10, 8192, %s3840_s26, %s3842_s25, %s3692_s11, %s3692_s11, %s3693_s21  }
  0x40   : > { %s2656_s27 = sshll.u32 %s347_s14, 7  ;;  %s3694_s22 = smov [#allocation8]  }
  0x41   : > { %s306_s24 = sshll.u32 %s3694_s22, 4  ;;  %s371_s29 = scalar_lea.vmem [#allocation7], %s2656_s27  ;;  %s307_s24 = int_to_ptr.vmem [resolvable:$true] %s306_s24 }
  0x42   : > { %s378_s15 = sshll.u32 %s371_s29, 4  ;;  %s3567_s28 = scalar_lea.vmem %s307_s24, 1024  ;;  %s3888_s15 = int_to_ptr.vmem [resolvable:$true] %s378_s15 }
  0x43   : > { %p3568_p1 = scmp.ne.s32.totalorder %s307_s24, %s3567_s28  ;;  %p4275_p4 = pneg %p3796_p7 }
  0x44   : > { %p3575_p3 = scmp.lt.s32.totalorder %s307_s24, %s307_s24  ;;  %p3576_p9 = scmp.lt.s32.totalorder %s3567_s28, %s3567_s28 }
  0x45   : > { %p3570_p5 = pnand %p3568_p1, %p4275_p4 }
  0x46   : > { %p3577_p10 = por %p3576_p9, %p3575_p3 }
  0x47   : > { %p3571_p8 = pneg %p3570_p5 }
  0x49   : > { %p3578_p11 = pnand %p3577_p10, %p3571_p8 }
  0x4b   : > { %3581 = shalt.err (!%p3578_p11)
}
  0x4c   : > { %s4276_s10 = smov 4   ;;  %s4277_s14 = smov 64  }
  0x4d   : > { %3267 = dma.hbm_to_vmem [thread:$0]  (!%p3796_p7), %s4250_s4, 1024, %s307_s24, [#allocation6], %s4277_s14, %s4277_s14, %s4276_s10  }
  0x4e   : > { %s2818_s29 = sshll.u32 %s3686_s18, 11  ;;  %s3695_s11 = smov [#allocation9]  }
  0x4f   : > { %s322_s21 = sshll.u32 %s3695_s11, 4  ;;  %s3886_s28 = scalar_lea.hbm %s4248_s2, %s2818_s29  ;;  %s323_s21 = int_to_ptr.vmem [resolvable:$true] %s322_s21 }
  0x50   : > { %s3593_s0 = scalar_lea.vmem %s323_s21, 1024  ;;  %p4278_p2 = pmov %p4275_p4 }
  0x51   : > { %p3594_p13 = scmp.ne.s32.totalorder %s323_s21, %s3593_s0  ;;  %p3601_p4 = scmp.lt.s32.totalorder %s323_s21, %s323_s21 }
  0x52   : > { %p3602_p5 = scmp.lt.s32.totalorder %s3593_s0, %s3593_s0 }
  0x53   : > { %p3596_p6 = pnand %p3594_p13, %p4278_p2 }
  0x54   : > { %p3603_p8 = por %p3602_p5, %p3601_p4 }
  0x55   : > { %p3597_p1 = pneg %p3596_p6 }
  0x57   : > { %p3604_p3 = pnand %p3603_p8, %p3597_p1 }
  0x59   : > { %3607 = shalt.err (!%p3604_p3)
}
  0x5a   : > { %3270 = dma.hbm_to_vmem [thread:$0]  (!%p3796_p7), %s4252_s6, 1024, %s323_s21, [#allocation10], %s4277_s14, %s4277_s14, %s4276_s10  }
  0x5b   : > { %s3608_s26 = scalar_lea.hbm %s3886_s28, 2048  ;;  %s3613_s23 = scalar_lea.hbm %s4248_s2, 4096 }
  0x5c   : > { %p3609_p9 = scmp.ne.s32.totalorder %s3886_s28, %s3608_s26  ;;  %p3614_p13 = scmp.lt.s32.totalorder %s3886_s28, %s4248_s2 }
  0x5d   : > { %p3615_p2 = scmp.lt.s32.totalorder %s3613_s23, %s3608_s26 }
  0x5e   : > { %p3611_p10 = pnand %p3609_p9, %p3530_p0 }
  0x5f   : > { %p3616_p6 = por %p3615_p2, %p3614_p13 }
  0x60   : > { %p3612_p11 = pneg %p3611_p10 }
  0x62   : > { %p3617_p1 = pnand %p3616_p6, %p3612_p11 }
  0x64   : > { %3620 = shalt.err (!%p3617_p1)
}
  0x65   : > { %s3621_s21 = scalar_lea.vmem %s3888_s15, 2048  ;;  %s3696_s27 = smov [#allocation7]  }
  0x66   : > { %p3622_p7 = scmp.ne.s32.totalorder %s3888_s15, %s3621_s21  ;;  %s3626_s22 = sshll.u32 %s3696_s27, 4  ;;  %s3627_s22 = int_to_ptr.vmem [resolvable:$false] %s3626_s22 }
  0x67   : > { %s3628_s18 = scalar_lea.vmem %s3627_s22, 4096  ;;  %p3629_p8 = scmp.lt.s32.totalorder %s3888_s15, %s3627_s22 }
  0x68   : > { %p3624_p4 = pnand %p3622_p7, %p3530_p0  ;;  %p3630_p3 = scmp.lt.s32.totalorder %s3628_s18, %s3621_s21 }
  0x6a   : > { %p3625_p5 = pneg %p3624_p4  ;;  %p3631_p9 = por %p3630_p3, %p3629_p8 }
  0x6c   : > { %p3632_p10 = pnand %p3631_p9, %p3625_p5 }
  0x6e   : > { %3635 = shalt.err (!%p3632_p10)
}
  0x6f   : > { %3277 = dma.hbm_to_vmem [thread:$0]  (!%p3836_p12), %s3886_s28, 2048, %s3888_s15, %s3842_s25, %s4277_s14, %s4277_s14, %s4276_s10  }
  0x70   : > { %p4279_p0 = scmp.ne.s32.totalorder %s4270_s20, 0 }
  0x71   : > { %s392_s24 = sand.u32 (!%p4279_p0), 1, %s3776_s9   ;;  %s394_s26 = sand.u32 (!%p4279_p0), 1, %s3678_s16  }
  0x72   : > { %390 = sbr.rel (%p4279_p0) target bundleno = 1125 (0x465), region = 60  ;;  %s2660_s0 = sshll.u32 (!%p4279_p0), %s394_s26, 9 }
  0x73   : > { %s393_s13 = scalar_lea.sflag (!%p4279_p0), [#allocation4], %s392_s24  ;;  %s3931_s23 = scalar_lea.vmem (!%p4279_p0), [#allocation3], %s2660_s0 }
  0x74   : > { %p4280_p11 = scmp.ne.s32.totalorder (!%p4279_p0), %s4269_s19, 0 }
  0x77   : > { %3653 = dma.done.wait (%p4280_p11), %s393_s13, 8192  }
  0x78   : > { %3655 = vsyncadd (%p4280_p11), %s393_s13, 4294959104  ;;  %p4281_p13 = scmp.eq.s32.totalorder %s3776_s9, 0 }
  0x7a   : > { %3657 = dma.done.wait (%p4281_p13), [#allocation6], 4096   ;;  %p4282_p12 = pmov %p4281_p13 }
  0x7b   : > { %s2662_s20 = sshll.u32 %s394_s26, 7 }
  0x7c   : > { %3659 = vsyncadd (%p4282_p12), [#allocation6], 4294963200  ;;  %s3941_s30 = scalar_lea.vmem [#allocation7], %s2662_s20 }
  0x7d   : > { %3661 = dma.done.wait (%p4280_p11), %s393_s13, 2048  }
  0x7e   : > { %3663 = vsyncadd (%p4280_p11), %s393_s13, 4294965248  ;;  %p4283_p2 = pmov %p4282_p12 }
  0x80   : > { %3665 = dma.done.wait (%p4283_p2), [#allocation6], 1024   ;;  %p4284_p6 = pmov %p4283_p2 }
  0x81   : > { %p4285_p1 = pmov %p4283_p2 }
  0x82   : > { %3667 = vsyncadd (%p4284_p6), [#allocation6], 4294966272 }
  0x83   : > { %3669 = dma.done.wait (%p4285_p1), [#allocation10], 1024   ;;  %p4286_p7 = pmov %p4285_p1 }
  0x84   : > { %v3326_v1 = vld [vmem:[#allocation5 + $0x78] sm:$0xff]   ;;  %v3330_v5 = vld [vmem:[#allocation5 + $0x70] sm:$0xff]   ;;  %v3334_v9 = vld [vmem:[#allocation5 + $0x68] sm:$0xff]   ;;  %vm3698_vm0 = vmmov 0   ;;  %vm2295_vm1 = vcmask 1041409   ;;  %vm2297_vm2 = vcmask 1042434  }
  0x85   : > { %3671 = vsyncadd (%p4286_p7), [#allocation10], 4294966272  ;;  %v3327_v2 = vld [vmem:[#allocation5 + $0xf8] sm:$0xff]   ;;  %2819 = vmatprep.subr.bf16.mxu0 %v3326_v1  ;;  %v3331_v6 = vld [vmem:[#allocation5 + $0xf0] sm:$0xff]   ;;  %vm2299_vm3 = vcmask 1043459   ;;  %vm2301_vm4 = vcmask 1044484  }
  0x86   : > { %v3328_v3 = vld [vmem:[#allocation5 + $0x38] sm:$0xff]   ;;  %2931 = vmatprep.subr.bf16.mxu1 %v3327_v2  ;;  %v3332_v7 = vld [vmem:[#allocation5 + $0x30] sm:$0xff]   ;;  %v3335_v10 = vld [vmem:[#allocation5 + $0xe8] sm:$0xff]   ;;  %vm2303_vm5 = vcmask 1045509   ;;  %vm2305_vm6 = vcmask 1046534   ;;  %vm2307_vm7 = vcmask 1047559  }
  0x87   : > { %v3329_v4 = vld [vmem:[#allocation5 + $0xb8] sm:$0xff]   ;;  %2820 = vmatpush3.bf16.msra.mxu0 %v3328_v3  ;;  %v3333_v8 = vld [vmem:[#allocation5 + $0xb0] sm:$0xff]   ;;  %v3336_v11 = vld [vmem:[#allocation5 + $0x28] sm:$0xff]   ;;  %s2665_s20 = sshll.u32 %s3776_s9, 1  ;;  %s4287_s15 = sld [smem:[#allocation18_spill]]  ;;  %vm2526_vm10 = vcmask 7168  }
  0x88   : > { %2932 = vmatpush3.bf16.msra.mxu1 %v3329_v4  ;;  %2821 = vmatprep.subr.bf16.mxu0 %v3330_v5  ;;  %v3337_v12 = vld [vmem:[#allocation5 + $0xa8] sm:$0xff]   ;;  %v3338_v13 = vld [vmem:[#allocation5 + $0x60] sm:$0xff]   ;;  %v3342_v17 = vld [vmem:[#allocation5 + $0x58] sm:$0xff]   ;;  %p462_p4 = scmp.lt.s32.totalorder %s2665_s20, 3 }
  0x89   : > { %2933 = vmatprep.subr.bf16.mxu1 %v3331_v6  ;;  %v3339_v14 = vld [vmem:[#allocation5 + $0xe0] sm:$0xff]   ;;  %v3343_v18 = vld [vmem:[#allocation5 + $0xd8] sm:$0xff]   ;;  %v3346_v21 = vld [vmem:[#allocation5 + $0x50] sm:$0xff]  }
  0x8a   : > { %v3340_v15 = vld [vmem:[#allocation5 + $0x20] sm:$0xff]   ;;  %v3344_v19 = vld [vmem:[#allocation5 + $0x18] sm:$0xff]   ;;  %v3347_v22 = vld [vmem:[#allocation5 + $0xd0] sm:$0xff]   ;;  %s4293_s20 = smov (!%p462_p4, %s2665_s20), 3 }
  0x8b   : > { %2822 = vmatpush3.bf16.msra.mxu0 %v3332_v7  ;;  %v3341_v16 = vld [vmem:[#allocation5 + $0xa0] sm:$0xff]   ;;  %v3345_v20 = vld [vmem:[#allocation5 + $0x98] sm:$0xff]   ;;  %v3348_v23 = vld [vmem:[#allocation5 + $0x10] sm:$0xff]  }
  0x8c   : > { %2934 = vmatpush3.bf16.msra.mxu1 %v3333_v8  ;;  %2823 = vmatprep.subr.bf16.mxu0 %v3334_v9  ;;  %v3349_v24 = vld [vmem:[#allocation5 + $0x90] sm:$0xff]   ;;  %v3350_v25 = vld [vmem:[#allocation5 + $0x48] sm:$0xff]   ;;  %v3354_v29 = vld [vmem:[#allocation5 + $0x40] sm:$0xff]  }
  0x8d   : > { %2935 = vmatprep.subr.bf16.mxu1 %v3335_v10  ;;  %v3351_v26 = vld [vmem:[#allocation5 + $0xc8] sm:$0xff]   ;;  %v3355_v30 = vld [vmem:[#allocation5 + $0xc0] sm:$0xff]   ;;  %v3454_v59 = vld [vmem:[#allocation8 + $0x38] sm:$0xff]  }
  0x8e   : > { %v3352_v27 = vld [vmem:[#allocation5 + $0x8] sm:$0xff]   ;;  %v3356_v31 = vld [vmem:[#allocation5] sm:$0xff]   ;;  %v3455_v60 = vld [vmem:[%s4249_s3 + $0x38] sm:$0xff]  }
  0x8f   : > { %2824 = vmatpush3.bf16.msra.mxu0 %v3336_v11  ;;  %v3353_v28 = vld [vmem:[#allocation5 + $0x88] sm:$0xff]   ;;  %v3357_v32 = vld [vmem:[#allocation5 + $0x80] sm:$0xff]   ;;  %v3456_v61 = vld [vmem:[#allocation8 + $0x30] sm:$0xff]  }
  0x90   : > { %2936 = vmatpush3.bf16.msra.mxu1 %v3337_v12  ;;  %2825 = vmatprep.subr.bf16.mxu0 %v3338_v13  ;;  %v3358_v33 = vld [vmem:[%s3931_s23] ss:$16 sps:$4 sm:$0xff]   ;;  %v3360_v34 = vld [vmem:[%s3931_s23 + $0x4] ss:$16 sps:$4 sm:$0xff]   ;;  %v3361_v35 = vld [vmem:[%s3931_s23 + $0x8] ss:$16 sps:$4 sm:$0xff]  }
  0x91   : > { %2937 = vmatprep.subr.bf16.mxu1 %v3339_v14  ;;  %v3363_v36 = vld [vmem:[%s3931_s23 + $0xc] ss:$16 sps:$4 sm:$0xff]   ;;  %1140 = vmatprep.mubr.bf16.mxu0 %v3360_v34  ;;  %v3364_v37 = vld [vmem:[%s3931_s23 + $0x24] ss:$16 sps:$4 sm:$0xff]   ;;  %v3368_v39 = vld [vmem:[%s3931_s23 + $0x20] ss:$16 sps:$4 sm:$0xff]  }
  0x92   : > { %1301 = vmatprep.mubr.bf16.mxu1 %v3363_v36  ;;  %v3366_v38 = vld [vmem:[%s3931_s23 + $0x2c] ss:$16 sps:$4 sm:$0xff]   ;;  %v3369_v40 = vld [vmem:[%s3931_s23 + $0x28] ss:$16 sps:$4 sm:$0xff]   ;;  %v3370_v41 = vld [vmem:[%s3931_s23 + $0x44] ss:$16 sps:$4 sm:$0xff]  }
  0x93   : > { %2826 = vmatpush3.bf16.msra.mxu0 %v3340_v15  ;;  %v3372_v42 = vld [vmem:[%s3931_s23 + $0x4c] ss:$16 sps:$4 sm:$0xff]   ;;  %v3374_v43 = vld [vmem:[%s3931_s23 + $0x40] ss:$16 sps:$4 sm:$0xff]   ;;  %v3375_v44 = vld [vmem:[%s3931_s23 + $0x48] ss:$16 sps:$4 sm:$0xff]  }
  0x94   : > { %2938 = vmatpush3.bf16.msra.mxu1 %v3341_v16  ;;  %2827 = vmatprep.subr.bf16.mxu0 %v3342_v17  ;;  %v3376_v45 = vld [vmem:[%s3931_s23 + $0x64] ss:$16 sps:$4 sm:$0xff]   ;;  %v3378_v46 = vld [vmem:[%s3931_s23 + $0x6c] ss:$16 sps:$4 sm:$0xff]   ;;  %v3380_v47 = vld [vmem:[%s3931_s23 + $0x60] ss:$16 sps:$4 sm:$0xff]  }
  0x95   : > { %2939 = vmatprep.subr.bf16.mxu1 %v3343_v18  ;;  %v3381_v48 = vld [vmem:[%s3931_s23 + $0x68] ss:$16 sps:$4 sm:$0xff]   ;;  %v3382_v49 = vld [vmem:[%s3931_s23 + $0x84] ss:$16 sps:$4 sm:$0xff]   ;;  %v3384_v50 = vld [vmem:[%s3931_s23 + $0x8c] ss:$16 sps:$4 sm:$0xff]  }
  0x96   : > { %v3386_v51 = vld [vmem:[%s3931_s23 + $0x80] ss:$16 sps:$4 sm:$0xff]   ;;  %v3387_v52 = vld [vmem:[%s3931_s23 + $0x88] ss:$16 sps:$4 sm:$0xff]   ;;  %v3388_v53 = vld [vmem:[%s3931_s23 + $0xa4] ss:$16 sps:$4 sm:$0xff]  }
  0x97   : > { %2828 = vmatpush3.bf16.msra.mxu0 %v3344_v19  ;;  %v3390_v54 = vld [vmem:[%s3931_s23 + $0xac] ss:$16 sps:$4 sm:$0xff]   ;;  %v3392_v55 = vld [vmem:[%s3931_s23 + $0xa0] ss:$16 sps:$4 sm:$0xff]   ;;  %v3393_v56 = vld [vmem:[%s3931_s23 + $0xa8] ss:$16 sps:$4 sm:$0xff]  }
  0x98   : > { %2940 = vmatpush3.bf16.msra.mxu1 %v3345_v20  ;;  %2829 = vmatprep.subr.bf16.mxu0 %v3346_v21  ;;  %v3394_v57 = vld [vmem:[%s3931_s23 + $0xc4] ss:$16 sps:$4 sm:$0xff]   ;;  %v3396_v58 = vld [vmem:[%s3931_s23 + $0xcc] ss:$16 sps:$4 sm:$0xff]   ;;  %v3398_v62 = vld [vmem:[%s3931_s23 + $0xc0] ss:$16 sps:$4 sm:$0xff]  }
  0x99   : > { %2941 = vmatprep.subr.bf16.mxu1 %v3347_v22  ;;  %v3457_v63 = vld [vmem:[%s4249_s3 + $0x30] sm:$0xff]   ;;  %v3399_v0 = vld [vmem:[%s3931_s23 + $0xc8] ss:$16 sps:$4 sm:$0xff]   ;;  %v3460_v5 = vld [vmem:[#allocation8 + $0x20] sm:$0xff]  }
  0x9a   : > { %v3400_v1 = vld [vmem:[%s3931_s23 + $0xe4] ss:$16 sps:$4 sm:$0xff]   ;;  %v3402_v2 = vld [vmem:[%s3931_s23 + $0xec] ss:$16 sps:$4 sm:$0xff]   ;;  %v3404_v7 = vld [vmem:[%s3931_s23 + $0xe0] ss:$16 sps:$4 sm:$0xff]  }
  0x9b   : > { %2830 = vmatpush3.bf16.msra.mxu0 %v3348_v23  ;;  %v3458_v3 = vld [vmem:[#allocation8 + $0x28] sm:$0xff]   ;;  %v3461_v6 = vld [vmem:[%s4249_s3 + $0x20] sm:$0xff]   ;;  %v3463_v20 = vld [vmem:[%s4249_s3 + $0x18] sm:$0xff]  }
  0x9c   : > { %2942 = vmatpush3.bf16.msra.mxu1 %v3349_v24  ;;  %2831 = vmatprep.subr.bf16.mxu0 %v3350_v25  ;;  %v3459_v4 = vld [vmem:[%s4249_s3 + $0x28] sm:$0xff]   ;;  %v3410_v11 = vld [vmem:[%s3931_s23 + $0x100] ss:$16 sps:$4 sm:$0xff]   ;;  %v3462_v19 = vld [vmem:[#allocation8 + $0x18] sm:$0xff]  }
  0x9d   : > { %2943 = vmatprep.subr.bf16.mxu1 %v3351_v26  ;;  %v3405_v8 = vld [vmem:[%s3931_s23 + $0xe8] ss:$16 sps:$4 sm:$0xff]   ;;  %v3406_v9 = vld [vmem:[%s3931_s23 + $0x104] ss:$16 sps:$4 sm:$0xff]   ;;  %v3408_v10 = vld [vmem:[%s3931_s23 + $0x10c] ss:$16 sps:$4 sm:$0xff]  }
  0x9e   : > { %v3411_v12 = vld [vmem:[%s3931_s23 + $0x108] ss:$16 sps:$4 sm:$0xff]   ;;  %v3412_v13 = vld [vmem:[%s3931_s23 + $0x124] ss:$16 sps:$4 sm:$0xff]   ;;  %v3414_v14 = vld [vmem:[%s3931_s23 + $0x12c] ss:$16 sps:$4 sm:$0xff]  }
  0x9f   : > { %2832 = vmatpush3.bf16.msra.mxu0 %v3352_v27  ;;  %v3416_v15 = vld [vmem:[%s3931_s23 + $0x120] ss:$16 sps:$4 sm:$0xff]   ;;  %v3417_v16 = vld [vmem:[%s3931_s23 + $0x128] ss:$16 sps:$4 sm:$0xff]   ;;  %v3418_v17 = vld [vmem:[%s3931_s23 + $0x144] ss:$16 sps:$4 sm:$0xff]  }
  0xa0   : > { %2944 = vmatpush3.bf16.msra.mxu1 %v3353_v28  ;;  %2833 = vmatprep.subr.bf16.mxu0 %v3354_v29  ;;  %v3420_v18 = vld [vmem:[%s3931_s23 + $0x14c] ss:$16 sps:$4 sm:$0xff]   ;;  %v3464_v21 = vld [vmem:[#allocation8 + $0x10] sm:$0xff]   ;;  %v3423_v26 = vld [vmem:[%s3931_s23 + $0x148] ss:$16 sps:$4 sm:$0xff]  }
  0xa1   : > { %2945 = vmatprep.subr.bf16.mxu1 %v3355_v30  ;;  %v3465_v22 = vld [vmem:[%s4249_s3 + $0x10] sm:$0xff]   ;;  %v3467_v25 = vld [vmem:[%s4249_s3 + $0x8] sm:$0xff]   ;;  %v3469_v30 = vld [vmem:[%s4249_s3] sm:$0xff]  }
  0xa2   : > { %v3422_v23 = vld [vmem:[%s3931_s23 + $0x140] ss:$16 sps:$4 sm:$0xff]   ;;  %v3466_v24 = vld [vmem:[#allocation8 + $0x8] sm:$0xff]   ;;  %v3424_v27 = vld [vmem:[%s3931_s23 + $0x164] ss:$16 sps:$4 sm:$0xff]  }
  0xa3   : > { %2834 = vmatpush3.bf16.msra.mxu0 %v3356_v31  ;;  %v3426_v28 = vld [vmem:[%s3931_s23 + $0x16c] ss:$16 sps:$4 sm:$0xff]   ;;  %v3468_v29 = vld [vmem:[#allocation8] sm:$0xff]   ;;  %v3435_v36 = vld [vmem:[%s3931_s23 + $0x188] ss:$16 sps:$4 sm:$0xff]  }
  0xa4   : > { %2946 = vmatpush3.bf16.msra.mxu1 %v3357_v32  ;;  %3109 = vmatprep.subr.bf16.mxu0 %v3454_v59  ;;  %v3428_v31 = vld [vmem:[%s3931_s23 + $0x160] ss:$16 sps:$4 sm:$0xff]   ;;  %v3429_v32 = vld [vmem:[%s3931_s23 + $0x168] ss:$16 sps:$4 sm:$0xff]   ;;  %v3432_v34 = vld [vmem:[%s3931_s23 + $0x18c] ss:$16 sps:$4 sm:$0xff]  }
  0xa5   : > { %3157 = vmatprep.subr.bf16.mxu1 %v3455_v60 }
  0xa6   : > { %1141 = vmatmul.mubr.bf16.vlgmr.msra.gmra.mxu0 %v3358_v33  ;;  %v3430_v33 = vld [vmem:[%s3931_s23 + $0x184] ss:$16 sps:$4 sm:$0xff]  }
  0xa7   : > { %1302 = vmatmul.mubr.bf16.vlgmr.msra.gmra.mxu1 %v3361_v35  ;;  %1148 = vmatprep.mubr.bf16.mxu0 %v3364_v37  ;;  %v3434_v35 = vld [vmem:[%s3931_s23 + $0x180] ss:$16 sps:$4 sm:$0xff]   ;;  %v3436_v37 = vld [vmem:[%s3931_s23 + $0x1a4] ss:$16 sps:$4 sm:$0xff]  }
  0xa8   : > { %1309 = vmatprep.mubr.bf16.mxu1 %v3366_v38  ;;  %3110 = vmatpush3.bf16.msra.mxu0 %v3454_v59  ;;  %v3438_v38 = vld [vmem:[%s3931_s23 + $0x1ac] ss:$16 sps:$4 sm:$0xff]   ;;  %v3480_v59 = vld [vmem:[%s3941_s30 + $0x50] sm:$0xff]  }
  0xa9   : > { %3158 = vmatpush3.bf16.msra.mxu1 %v3455_v60  ;;  %3111 = vmatprep.subr.bf16.mxu0 %v3456_v61  ;;  %v3481_v60 = vld [vmem:[%s3941_s30 + $0x58] sm:$0xff]  }
  0xaa   : > { %3159 = vmatprep.subr.bf16.mxu1 %v3457_v63 }
  0xac   : > { %3112 = vmatpush3.bf16.msra.mxu0 %v3456_v61  ;;  %v3482_v61 = vld [vmem:[%s3941_s30 + $0x60] sm:$0xff]  }
  0xad   : > { %3160 = vmatpush3.bf16.msra.mxu1 %v3457_v63  ;;  %3113 = vmatprep.subr.bf16.mxu0 %v3458_v3  ;;  %v3484_v63 = vld [vmem:[%s3941_s30 + $0x70] sm:$0xff]  }
  0xae   : > { %1149 = vmatmul.mubr.bf16.gmra.mxu0 %v3368_v39  ;;  %3161 = vmatprep.subr.bf16.mxu1 %v3459_v4  ;;  %v3440_v39 = vld [vmem:[%s3931_s23 + $0x1a0] ss:$16 sps:$4 sm:$0xff]  }
  0xaf   : > { %1310 = vmatmul.mubr.bf16.gmra.mxu1 %v3369_v40  ;;  %1156 = vmatprep.mubr.bf16.mxu0 %v3370_v41  ;;  %v3441_v40 = vld [vmem:[%s3931_s23 + $0x1a8] ss:$16 sps:$4 sm:$0xff]   ;;  %v3442_v41 = vld [vmem:[%s3931_s23 + $0x1c4] ss:$16 sps:$4 sm:$0xff]  }
  0xb0   : > { %1317 = vmatprep.mubr.bf16.mxu1 %v3372_v42  ;;  %3114 = vmatpush3.bf16.msra.mxu0 %v3458_v3  ;;  %v3444_v42 = vld [vmem:[%s3931_s23 + $0x1cc] ss:$16 sps:$4 sm:$0xff]  }
  0xb1   : > { %3162 = vmatpush3.bf16.msra.mxu1 %v3459_v4  ;;  %3115 = vmatprep.subr.bf16.mxu0 %v3460_v5 }
  0xb2   : > { %3163 = vmatprep.subr.bf16.mxu1 %v3461_v6 }
  0xb4   : > { %3116 = vmatpush3.bf16.msra.mxu0 %v3460_v5 }
  0xb5   : > { %3164 = vmatpush3.bf16.msra.mxu1 %v3461_v6  ;;  %3117 = vmatprep.subr.bf16.mxu0 %v3462_v19 }
  0xb6   : > { %1157 = vmatmul.mubr.bf16.gmra.mxu0 %v3374_v43  ;;  %3165 = vmatprep.subr.bf16.mxu1 %v3463_v20  ;;  %v3446_v43 = vld [vmem:[%s3931_s23 + $0x1c0] ss:$16 sps:$4 sm:$0xff]  }
  0xb7   : > { %1318 = vmatmul.mubr.bf16.gmra.mxu1 %v3375_v44  ;;  %1164 = vmatprep.mubr.bf16.mxu0 %v3376_v45  ;;  %v3447_v44 = vld [vmem:[%s3931_s23 + $0x1c8] ss:$16 sps:$4 sm:$0xff]   ;;  %v3448_v45 = vld [vmem:[%s3931_s23 + $0x1e4] ss:$16 sps:$4 sm:$0xff]  }
  0xb8   : > { %1325 = vmatprep.mubr.bf16.mxu1 %v3378_v46  ;;  %3118 = vmatpush3.bf16.msra.mxu0 %v3462_v19  ;;  %v3450_v46 = vld [vmem:[%s3931_s23 + $0x1ec] ss:$16 sps:$4 sm:$0xff]  }
  0xb9   : > { %3166 = vmatpush3.bf16.msra.mxu1 %v3463_v20  ;;  %3119 = vmatprep.subr.bf16.mxu0 %v3464_v21 }
  0xba   : > { %3167 = vmatprep.subr.bf16.mxu1 %v3465_v22 }
  0xbc   : > { %3120 = vmatpush3.bf16.msra.mxu0 %v3464_v21 }
  0xbd   : > { %3168 = vmatpush3.bf16.msra.mxu1 %v3465_v22  ;;  %3121 = vmatprep.subr.bf16.mxu0 %v3466_v24 }
  0xbe   : > { %1165 = vmatmul.mubr.bf16.gmra.mxu0 %v3380_v47  ;;  %3169 = vmatprep.subr.bf16.mxu1 %v3467_v25  ;;  %v3452_v47 = vld [vmem:[%s3931_s23 + $0x1e0] ss:$16 sps:$4 sm:$0xff]  }
  0xbf   : > { %1326 = vmatmul.mubr.bf16.gmra.mxu1 %v3381_v48  ;;  %1172 = vmatprep.mubr.bf16.mxu0 %v3382_v49  ;;  %v3453_v48 = vld [vmem:[%s3931_s23 + $0x1e8] ss:$16 sps:$4 sm:$0xff]   ;;  %v3470_v49 = vld [vmem:[%s3941_s30] sm:$0xff]  }
  0xc0   : > { %1333 = vmatprep.mubr.bf16.mxu1 %v3384_v50  ;;  %3122 = vmatpush3.bf16.msra.mxu0 %v3466_v24  ;;  %v3471_v50 = vld [vmem:[%s3941_s30 + $0x8] sm:$0xff]  }
  0xc1   : > { %3170 = vmatpush3.bf16.msra.mxu1 %v3467_v25  ;;  %3123 = vmatprep.subr.bf16.mxu0 %v3468_v29 }
  0xc2   : > { %3171 = vmatprep.subr.bf16.mxu1 %v3469_v30 }
  0xc4   : > { %3124 = vmatpush3.bf16.msra.mxu0 %v3468_v29 }
  0xc5   : > { %3172 = vmatpush3.bf16.msra.mxu1 %v3469_v30 }
  0xc6   : > { %1173 = vmatmul.mubr.bf16.gmra.mxu0 %v3386_v51  ;;  %v3472_v51 = vld [vmem:[%s3941_s30 + $0x10] sm:$0xff]  }
  0xc7   : > { %1334 = vmatmul.mubr.bf16.gmra.mxu1 %v3387_v52  ;;  %1180 = vmatprep.mubr.bf16.mxu0 %v3388_v53  ;;  %v3473_v52 = vld [vmem:[%s3941_s30 + $0x18] sm:$0xff]   ;;  %v3474_v53 = vld [vmem:[%s3941_s30 + $0x20] sm:$0xff]  }
  0xc8   : > { %1341 = vmatprep.mubr.bf16.mxu1 %v3390_v54  ;;  %v3475_v54 = vld [vmem:[%s3941_s30 + $0x28] sm:$0xff]  }
  0xce   : > { %1181 = vmatmul.mubr.bf16.gmra.mxu0 %v3392_v55  ;;  %v3476_v55 = vld [vmem:[%s3941_s30 + $0x30] sm:$0xff]  }
  0xcf   : > { %1342 = vmatmul.mubr.bf16.gmra.mxu1 %v3393_v56  ;;  %1188 = vmatprep.mubr.bf16.mxu0 %v3394_v57  ;;  %v3477_v56 = vld [vmem:[%s3941_s30 + $0x38] sm:$0xff]   ;;  %v3478_v57 = vld [vmem:[%s3941_s30 + $0x40] sm:$0xff]  }
  0xd0   : > { %1349 = vmatprep.mubr.bf16.mxu1 %v3396_v58  ;;  %v3479_v58 = vld [vmem:[%s3941_s30 + $0x48] sm:$0xff]  }
  0xd6   : > { %1189 = vmatmul.mubr.bf16.gmra.mxu0 %v3398_v62  ;;  %v3483_v62 = vld [vmem:[%s3941_s30 + $0x68] sm:$0xff]  }
  0xd7   : > { %1350 = vmatmul.mubr.bf16.gmra.mxu1 %v3399_v0  ;;  %1196 = vmatprep.mubr.bf16.mxu0 %v3400_v1  ;;  %v3485_v0 = vld [vmem:[%s3941_s30 + $0x78] sm:$0xff]   ;;  %s2666_s30 = sshll.u32 %s4293_s20, 3 }
  0xd8   : > { %1357 = vmatprep.mubr.bf16.mxu1 %v3402_v2  ;;  %s465_s10 = scalar_lea.vmem %s4287_s15, %s2666_s30 }
  0xde   : > { %1197 = vmatmul.mubr.bf16.gmra.mxu0 %v3404_v7 }
  0xdf   : > { %1358 = vmatmul.mubr.bf16.gmra.mxu1 %v3405_v8  ;;  %1204 = vmatprep.mubr.bf16.mxu0 %v3406_v9 }
  0xe0   : > { %1365 = vmatprep.mubr.bf16.mxu1 %v3408_v10 }
  0xe6   : > { %1205 = vmatmul.mubr.bf16.gmra.mxu0 %v3410_v11 }
  0xe7   : > { %1366 = vmatmul.mubr.bf16.gmra.mxu1 %v3411_v12  ;;  %1212 = vmatprep.mubr.bf16.mxu0 %v3412_v13 }
  0xe8   : > { %1373 = vmatprep.mubr.bf16.mxu1 %v3414_v14 }
  0xee   : > { %1213 = vmatmul.mubr.bf16.gmra.mxu0 %v3416_v15 }
  0xef   : > { %1374 = vmatmul.mubr.bf16.gmra.mxu1 %v3417_v16  ;;  %1220 = vmatprep.mubr.bf16.mxu0 %v3418_v17 }
  0xf0   : > { %1381 = vmatprep.mubr.bf16.mxu1 %v3420_v18 }
  0xf6   : > { %1221 = vmatmul.mubr.bf16.gmra.mxu0 %v3422_v23 }
  0xf7   : > { %1382 = vmatmul.mubr.bf16.gmra.mxu1 %v3423_v26  ;;  %1228 = vmatprep.mubr.bf16.mxu0 %v3424_v27 }
  0xf8   : > { %1389 = vmatprep.mubr.bf16.mxu1 %v3426_v28 }
  0xfe   : > { %1229 = vmatmul.mubr.bf16.gmra.mxu0 %v3428_v31 }
  0xff   : > { %1390 = vmatmul.mubr.bf16.gmra.mxu1 %v3429_v32  ;;  %1236 = vmatprep.mubr.bf16.mxu0 %v3430_v33 }
 0x100   : > { %1397 = vmatprep.mubr.bf16.mxu1 %v3432_v34 }
 0x106   : > { %1237 = vmatmul.mubr.bf16.gmra.mxu0 %v3434_v35 }
 0x107   : > { %1398 = vmatmul.mubr.bf16.gmra.mxu1 %v3435_v36  ;;  %1244 = vmatprep.mubr.bf16.mxu0 %v3436_v37 }
 0x108   : > { %1405 = vmatprep.mubr.bf16.mxu1 %v3438_v38 }
 0x10e   : > { %1245 = vmatmul.mubr.bf16.gmra.mxu0 %v3440_v39 }
 0x10f   : > { %1406 = vmatmul.mubr.bf16.gmra.mxu1 %v3441_v40  ;;  %1252 = vmatprep.mubr.bf16.mxu0 %v3442_v41 }
 0x110   : > { %1413 = vmatprep.mubr.bf16.mxu1 %v3444_v42 }
 0x116   : > { %1253 = vmatmul.mubr.bf16.gmra.mxu0 %v3446_v43 }
 0x117   : > { %1414 = vmatmul.mubr.bf16.gmra.mxu1 %v3447_v44  ;;  %1260 = vmatprep.mubr.bf16.mxu0 %v3448_v45 }
 0x118   : > { %1421 = vmatprep.mubr.bf16.mxu1 %v3450_v46 }
 0x11e   : > { %1261 = vmatmul.mubr.bf16.gmra.mxu0 %v3452_v47 }
 0x11f   : > { %1422 = vmatmul.mubr.bf16.gmra.mxu1 %v3453_v48 }
 0x120   : > { %3173 = vmatprep.mubr.bf16.mxu1 %v3470_v49 }
 0x127   : > { %3174 = vmatmul.mubr.bf16.vlgmr.msra.gmra.mxu1 %v3471_v50 }
 0x128   : > { %3177 = vmatprep.mubr.bf16.mxu1 %v3472_v51 }
 0x12f   : > { %3178 = vmatmul.mubr.bf16.gmra.mxu1 %v3473_v52 }
 0x130   : > { %3181 = vmatprep.mubr.bf16.mxu1 %v3474_v53 }
 0x137   : > { %3182 = vmatmul.mubr.bf16.gmra.mxu1 %v3475_v54 }
 0x138   : > { %3185 = vmatprep.mubr.bf16.mxu1 %v3476_v55 }
 0x13f   : > { %3186 = vmatmul.mubr.bf16.gmra.mxu1 %v3477_v56 }
 0x140   : > { %3189 = vmatprep.mubr.bf16.mxu1 %v3478_v57 }
 0x147   : > { %3190 = vmatmul.mubr.bf16.gmra.mxu1 %v3479_v58 }
 0x148   : > { %3193 = vmatprep.mubr.bf16.mxu1 %v3480_v59 }
 0x14f   : > { %3194 = vmatmul.mubr.bf16.gmra.mxu1 %v3481_v60 }
 0x150   : > { %3197 = vmatprep.mubr.bf16.mxu1 %v3482_v61 }
 0x157   : > { %3198 = vmatmul.mubr.bf16.gmra.mxu1 %v3483_v62 }
 0x158   : > { %3201 = vmatprep.mubr.bf16.mxu1 %v3484_v63 }
 0x15f   : > { %3202 = vmatmul.mubr.bf16.gmra.mxu1 %v3485_v0 }
 0x166   : > { %v2835_v1 = vpop.f32.mrf.mxu0 }
 0x167   : > { %v2947_v2 = vpop.f32.mrf.mxu1 }
 0x168   : > { %v2836_v3 = vpop.f32.mrf.mxu0 }
 0x169   : > { %v2948_v4 = vpop.f32.mrf.mxu1  ;;  %v2837_v7 = vadd.f32 %v2836_v3, %v2835_v1 }
 0x16a   : > { %v2838_v5 = vpop.f32.mrf.mxu0  ;;  %v2949_v8 = vadd.f32 %v2948_v4, %v2947_v2 }
 0x16b   : > { %v2950_v6 = vpop.f32.mrf.mxu1 }
 0x16c   : > { %v2839_v9 = vpop.f32.mrf.mxu0  ;;  %v1304_v15 = vadd.f32 %v2949_v8, %v2837_v7 }
 0x16d   : > { %v2840_v10 = vadd.f32 %v2839_v9, %v2838_v5  ;;  %v2951_v11 = vpop.f32.mrf.mxu1 }
 0x16e   : > { %v2952_v12 = vadd.f32 %v2951_v11, %v2950_v6  ;;  %v2841_v13 = vpop.f32.mrf.mxu0 }
 0x16f   : > { %v2953_v14 = vpop.f32.mrf.mxu1 }
 0x170   : > { %v1307_v16 = vadd.f32 %v2952_v12, %v2840_v10  ;;  %v2842_v17 = vpop.f32.mrf.mxu0 }
 0x171   : > { %v2954_v18 = vpop.f32.mrf.mxu1  ;;  %v2843_v22 = vadd.f32 %v2842_v17, %v2841_v13 }
 0x172   : > { %v2844_v19 = vpop.f32.mrf.mxu0  ;;  %v1478_v20 = vpack.c.bf16 %v1307_v16, %v1304_v15  ;;  %v2955_v23 = vadd.f32 %v2954_v18, %v2953_v14 }
 0x173   : > { %v2956_v21 = vpop.f32.mrf.mxu1 }
 0x174   : > { %3125 = vmatprep.mubr.bf16.mxu0 %v1478_v20  ;;  %v2845_v24 = vpop.f32.mrf.mxu0  ;;  %v1312_v30 = vadd.f32 %v2955_v23, %v2843_v22 }
 0x175   : > { %v2846_v25 = vadd.f32 %v2845_v24, %v2844_v19  ;;  %v2957_v26 = vpop.f32.mrf.mxu1 }
 0x176   : > { %v2958_v27 = vadd.f32 %v2957_v26, %v2956_v21  ;;  %v2847_v28 = vpop.f32.mrf.mxu0 }
 0x177   : > { %v2959_v29 = vpop.f32.mrf.mxu1 }
 0x178   : > { %v1315_v31 = vadd.f32 %v2958_v27, %v2846_v25  ;;  %v2848_v32 = vpop.f32.mrf.mxu0 }
 0x179   : > { %v2960_v33 = vpop.f32.mrf.mxu1  ;;  %v2849_v37 = vadd.f32 %v2848_v32, %v2847_v28 }
 0x17a   : > { %v1479_v34 = vpack.c.bf16 %v1315_v31, %v1312_v30  ;;  %v2850_v35 = vpop.f32.mrf.mxu0  ;;  %v2961_v38 = vadd.f32 %v2960_v33, %v2959_v29 }
 0x17b   : > { %v2962_v36 = vpop.f32.mrf.mxu1 }
 0x17c   : > { %3126 = vmatmul.mubr.bf16.vlgmr.msra.gmra.mxu0 %v1479_v34  ;;  %v2851_v39 = vpop.f32.mrf.mxu0  ;;  %v1320_v45 = vadd.f32 %v2961_v38, %v2849_v37 }
 0x17d   : > { %v2852_v40 = vadd.f32 %v2851_v39, %v2850_v35  ;;  %v2963_v41 = vpop.f32.mrf.mxu1 }
 0x17e   : > { %v2964_v42 = vadd.f32 %v2963_v41, %v2962_v36  ;;  %v2853_v43 = vpop.f32.mrf.mxu0 }
 0x17f   : > { %v2965_v44 = vpop.f32.mrf.mxu1 }
 0x180   : > { %v1323_v46 = vadd.f32 %v2964_v42, %v2852_v40  ;;  %v2854_v47 = vpop.f32.mrf.mxu0 }
 0x181   : > { %v2966_v48 = vpop.f32.mrf.mxu1  ;;  %v2855_v52 = vadd.f32 %v2854_v47, %v2853_v43 }
 0x182   : > { %v2856_v49 = vpop.f32.mrf.mxu0  ;;  %v1480_v50 = vpack.c.bf16 %v1323_v46, %v1320_v45  ;;  %v2967_v53 = vadd.f32 %v2966_v48, %v2965_v44 }
 0x183   : > { %v2968_v51 = vpop.f32.mrf.mxu1 }
 0x184   : > { %3129 = vmatprep.mubr.bf16.mxu0 %v1480_v50  ;;  %v2857_v54 = vpop.f32.mrf.mxu0  ;;  %v1328_v60 = vadd.f32 %v2967_v53, %v2855_v52 }
 0x185   : > { %v2858_v55 = vadd.f32 %v2857_v54, %v2856_v49  ;;  %v2969_v56 = vpop.f32.mrf.mxu1 }
 0x186   : > { %v2970_v57 = vadd.f32 %v2969_v56, %v2968_v51  ;;  %v2859_v58 = vpop.f32.mrf.mxu0 }
 0x187   : > { %v2971_v59 = vpop.f32.mrf.mxu1 }
 0x188   : > { %v1331_v61 = vadd.f32 %v2970_v57, %v2858_v55  ;;  %v2860_v62 = vpop.f32.mrf.mxu0 }
 0x189   : > { %v2972_v63 = vpop.f32.mrf.mxu1  ;;  %v2861_v3 = vadd.f32 %v2860_v62, %v2859_v58 }
 0x18a   : > { %v2862_v0 = vpop.f32.mrf.mxu0  ;;  %v1481_v1 = vpack.c.bf16 %v1331_v61, %v1328_v60  ;;  %v2973_v4 = vadd.f32 %v2972_v63, %v2971_v59 }
 0x18b   : > { %v2974_v2 = vpop.f32.mrf.mxu1 }
 0x18c   : > { %3130 = vmatmul.mubr.bf16.gmra.mxu0 %v1481_v1  ;;  %v2863_v5 = vpop.f32.mrf.mxu0  ;;  %v1336_v11 = vadd.f32 %v2973_v4, %v2861_v3 }
 0x18d   : > { %v2864_v6 = vadd.f32 %v2863_v5, %v2862_v0  ;;  %v2975_v7 = vpop.f32.mrf.mxu1 }
 0x18e   : > { %v2976_v8 = vadd.f32 %v2975_v7, %v2974_v2  ;;  %v2865_v9 = vpop.f32.mrf.mxu0 }
 0x18f   : > { %v2977_v10 = vpop.f32.mrf.mxu1 }
 0x190   : > { %v1339_v12 = vadd.f32 %v2976_v8, %v2864_v6  ;;  %v2866_v13 = vpop.f32.mrf.mxu0 }
 0x191   : > { %v2978_v14 = vpop.f32.mrf.mxu1  ;;  %v2867_v18 = vadd.f32 %v2866_v13, %v2865_v9 }
 0x192   : > { %v2868_v15 = vpop.f32.mrf.mxu0  ;;  %v1482_v16 = vpack.c.bf16 %v1339_v12, %v1336_v11  ;;  %v2979_v19 = vadd.f32 %v2978_v14, %v2977_v10 }
 0x193   : > { %v2980_v17 = vpop.f32.mrf.mxu1 }
 0x194   : > { %3133 = vmatprep.mubr.bf16.mxu0 %v1482_v16  ;;  %v2869_v20 = vpop.f32.mrf.mxu0  ;;  %v1344_v26 = vadd.f32 %v2979_v19, %v2867_v18 }
 0x195   : > { %v2870_v21 = vadd.f32 %v2869_v20, %v2868_v15  ;;  %v2981_v22 = vpop.f32.mrf.mxu1 }
 0x196   : > { %v2982_v23 = vadd.f32 %v2981_v22, %v2980_v17  ;;  %v2871_v24 = vpop.f32.mrf.mxu0 }
 0x197   : > { %v2983_v25 = vpop.f32.mrf.mxu1 }
 0x198   : > { %v1347_v27 = vadd.f32 %v2982_v23, %v2870_v21  ;;  %v2872_v28 = vpop.f32.mrf.mxu0 }
 0x199   : > { %v2984_v29 = vpop.f32.mrf.mxu1  ;;  %v2873_v33 = vadd.f32 %v2872_v28, %v2871_v24 }
 0x19a   : > { %v2874_v30 = vpop.f32.mrf.mxu0  ;;  %v1483_v31 = vpack.c.bf16 %v1347_v27, %v1344_v26  ;;  %v2985_v34 = vadd.f32 %v2984_v29, %v2983_v25 }
 0x19b   : > { %v2986_v32 = vpop.f32.mrf.mxu1 }
 0x19c   : > { %3134 = vmatmul.mubr.bf16.gmra.mxu0 %v1483_v31  ;;  %v2875_v35 = vpop.f32.mrf.mxu0  ;;  %v1352_v41 = vadd.f32 %v2985_v34, %v2873_v33 }
 0x19d   : > { %v2876_v36 = vadd.f32 %v2875_v35, %v2874_v30  ;;  %v2987_v37 = vpop.f32.mrf.mxu1 }
 0x19e   : > { %v2988_v38 = vadd.f32 %v2987_v37, %v2986_v32  ;;  %v2877_v39 = vpop.f32.mrf.mxu0 }
 0x19f   : > { %v2989_v40 = vpop.f32.mrf.mxu1 }
 0x1a0   : > { %v1355_v42 = vadd.f32 %v2988_v38, %v2876_v36  ;;  %v2878_v43 = vpop.f32.mrf.mxu0 }
 0x1a1   : > { %v2990_v44 = vpop.f32.mrf.mxu1  ;;  %v2879_v48 = vadd.f32 %v2878_v43, %v2877_v39 }
 0x1a2   : > { %v2880_v45 = vpop.f32.mrf.mxu0  ;;  %v1484_v46 = vpack.c.bf16 %v1355_v42, %v1352_v41  ;;  %v2991_v49 = vadd.f32 %v2990_v44, %v2989_v40 }
 0x1a3   : > { %v2992_v47 = vpop.f32.mrf.mxu1 }
 0x1a4   : > { %3137 = vmatprep.mubr.bf16.mxu0 %v1484_v46  ;;  %v2881_v50 = vpop.f32.mrf.mxu0  ;;  %v1360_v56 = vadd.f32 %v2991_v49, %v2879_v48 }
 0x1a5   : > { %v2882_v51 = vadd.f32 %v2881_v50, %v2880_v45  ;;  %v2993_v52 = vpop.f32.mrf.mxu1 }
 0x1a6   : > { %v2994_v53 = vadd.f32 %v2993_v52, %v2992_v47  ;;  %v2883_v54 = vpop.f32.mrf.mxu0 }
 0x1a7   : > { %v2995_v55 = vpop.f32.mrf.mxu1 }
 0x1a8   : > { %v1363_v57 = vadd.f32 %v2994_v53, %v2882_v51  ;;  %v2884_v58 = vpop.f32.mrf.mxu0 }
 0x1a9   : > { %v2996_v59 = vpop.f32.mrf.mxu1  ;;  %v2885_v63 = vadd.f32 %v2884_v58, %v2883_v54 }
 0x1aa   : > { %v2886_v60 = vpop.f32.mrf.mxu0  ;;  %v1485_v61 = vpack.c.bf16 %v1363_v57, %v1360_v56  ;;  %v2997_v0 = vadd.f32 %v2996_v59, %v2995_v55 }
 0x1ab   : > { %v2998_v62 = vpop.f32.mrf.mxu1 }
 0x1ac   : > { %3138 = vmatmul.mubr.bf16.gmra.mxu0 %v1485_v61  ;;  %v2887_v1 = vpop.f32.mrf.mxu0  ;;  %v1368_v7 = vadd.f32 %v2997_v0, %v2885_v63 }
 0x1ad   : > { %v2888_v2 = vadd.f32 %v2887_v1, %v2886_v60  ;;  %v2999_v3 = vpop.f32.mrf.mxu1 }
 0x1ae   : > { %v3000_v4 = vadd.f32 %v2999_v3, %v2998_v62  ;;  %v2889_v5 = vpop.f32.mrf.mxu0 }
 0x1af   : > { %v3001_v6 = vpop.f32.mrf.mxu1 }
 0x1b0   : > { %v1371_v8 = vadd.f32 %v3000_v4, %v2888_v2  ;;  %v2890_v9 = vpop.f32.mrf.mxu0 }
 0x1b1   : > { %v3002_v10 = vpop.f32.mrf.mxu1  ;;  %v2891_v14 = vadd.f32 %v2890_v9, %v2889_v5 }
 0x1b2   : > { %v2892_v11 = vpop.f32.mrf.mxu0  ;;  %v1486_v12 = vpack.c.bf16 %v1371_v8, %v1368_v7  ;;  %v3003_v15 = vadd.f32 %v3002_v10, %v3001_v6 }
 0x1b3   : > { %v3004_v13 = vpop.f32.mrf.mxu1 }
 0x1b4   : > { %3141 = vmatprep.mubr.bf16.mxu0 %v1486_v12  ;;  %v2893_v16 = vpop.f32.mrf.mxu0  ;;  %v1376_v22 = vadd.f32 %v3003_v15, %v2891_v14 }
 0x1b5   : > { %v2894_v17 = vadd.f32 %v2893_v16, %v2892_v11  ;;  %v3005_v18 = vpop.f32.mrf.mxu1 }
 0x1b6   : > { %v3006_v19 = vadd.f32 %v3005_v18, %v3004_v13  ;;  %v2895_v20 = vpop.f32.mrf.mxu0 }
 0x1b7   : > { %v3007_v21 = vpop.f32.mrf.mxu1 }
 0x1b8   : > { %v1379_v23 = vadd.f32 %v3006_v19, %v2894_v17  ;;  %v2896_v24 = vpop.f32.mrf.mxu0 }
 0x1b9   : > { %v3008_v25 = vpop.f32.mrf.mxu1  ;;  %v2897_v29 = vadd.f32 %v2896_v24, %v2895_v20 }
 0x1ba   : > { %v2898_v26 = vpop.f32.mrf.mxu0  ;;  %v1487_v27 = vpack.c.bf16 %v1379_v23, %v1376_v22  ;;  %v3009_v30 = vadd.f32 %v3008_v25, %v3007_v21 }
 0x1bb   : > { %v3010_v28 = vpop.f32.mrf.mxu1 }
 0x1bc   : > { %3142 = vmatmul.mubr.bf16.gmra.mxu0 %v1487_v27  ;;  %v2899_v31 = vpop.f32.mrf.mxu0  ;;  %v1384_v37 = vadd.f32 %v3009_v30, %v2897_v29 }
 0x1bd   : > { %v2900_v32 = vadd.f32 %v2899_v31, %v2898_v26  ;;  %v3011_v33 = vpop.f32.mrf.mxu1 }
 0x1be   : > { %v3012_v34 = vadd.f32 %v3011_v33, %v3010_v28  ;;  %v2901_v35 = vpop.f32.mrf.mxu0 }
 0x1bf   : > { %v3013_v36 = vpop.f32.mrf.mxu1 }
 0x1c0   : > { %v1387_v38 = vadd.f32 %v3012_v34, %v2900_v32  ;;  %v2902_v39 = vpop.f32.mrf.mxu0 }
 0x1c1   : > { %v3014_v40 = vpop.f32.mrf.mxu1  ;;  %v2903_v44 = vadd.f32 %v2902_v39, %v2901_v35 }
 0x1c2   : > { %v2904_v41 = vpop.f32.mrf.mxu0  ;;  %v1488_v42 = vpack.c.bf16 %v1387_v38, %v1384_v37  ;;  %v3015_v45 = vadd.f32 %v3014_v40, %v3013_v36 }
 0x1c3   : > { %v3016_v43 = vpop.f32.mrf.mxu1 }
 0x1c4   : > { %3145 = vmatprep.mubr.bf16.mxu0 %v1488_v42  ;;  %v2905_v46 = vpop.f32.mrf.mxu0  ;;  %v1392_v52 = vadd.f32 %v3015_v45, %v2903_v44 }
 0x1c5   : > { %v2906_v47 = vadd.f32 %v2905_v46, %v2904_v41  ;;  %v3017_v48 = vpop.f32.mrf.mxu1 }
 0x1c6   : > { %v3018_v49 = vadd.f32 %v3017_v48, %v3016_v43  ;;  %v2907_v50 = vpop.f32.mrf.mxu0 }
 0x1c7   : > { %v3019_v51 = vpop.f32.mrf.mxu1 }
 0x1c8   : > { %v1395_v53 = vadd.f32 %v3018_v49, %v2906_v47  ;;  %v2908_v54 = vpop.f32.mrf.mxu0  ;;  %v3486_v49 = vld [vmem:[#allocation9 + $0x38] sm:$0xff]  }
 0x1c9   : > { %v3020_v55 = vpop.f32.mrf.mxu1  ;;  %v2909_v59 = vadd.f32 %v2908_v54, %v2907_v50  ;;  %v3697_v50 = vmov 0.0  }
 0x1ca   : > { %v2910_v56 = vpop.f32.mrf.mxu0  ;;  %v1489_v57 = vpack.c.bf16 %v1395_v53, %v1392_v52  ;;  %v3021_v60 = vadd.f32 %v3020_v55, %v3019_v51  ;;  %3205 = vmatprep.subr.bf16.mxu0 %v3697_v50  ;;  %3225 = vmatprep.subr.bf16.mxu1 %v3697_v50  ;;  %v3487_v51 = vld [vmem:[#allocation9 + $0x30] sm:$0xff]   ;;  %v3488_v52 = vld [vmem:[#allocation9 + $0x28] sm:$0xff]   ;;  %v3489_v53 = vld [vmem:[#allocation9 + $0x20] sm:$0xff]  }
 0x1cb   : > { %v3022_v58 = vpop.f32.mrf.mxu1  ;;  %3206 = vmatpush3.bf16.msra.mxu0 %v3486_v49  ;;  %v3490_v55 = vld [vmem:[#allocation9 + $0x18] sm:$0xff]   ;;  %3241 = vmatprep.mubr.msk.bf16.mxu1 %vm3698_vm0, %v3697_v50 }
 0x1cc   : > { %3146 = vmatmul.mubr.bf16.gmra.mxu0 %v1489_v57  ;;  %v2911_v61 = vpop.f32.mrf.mxu0  ;;  %v1400_v3 = vadd.f32 %v3021_v60, %v2909_v59  ;;  %3207 = vmatprep.subr.bf16.mxu0 %v3697_v50  ;;  %v3491_v57 = vld [vmem:[#allocation9 + $0x10] sm:$0xff]   ;;  %v3492_v60 = vld [vmem:[#allocation9 + $0x8] sm:$0xff]  }
 0x1cd   : > { %v2912_v62 = vadd.f32 %v2911_v61, %v2910_v56  ;;  %v3023_v63 = vpop.f32.mrf.mxu1 }
 0x1ce   : > { %v3024_v0 = vadd.f32 %v3023_v63, %v3022_v58  ;;  %v2913_v1 = vpop.f32.mrf.mxu0  ;;  %v3493_v63 = vld [vmem:[#allocation9] sm:$0xff]  }
 0x1cf   : > { %v3025_v2 = vpop.f32.mrf.mxu1  ;;  %3208 = vmatpush3.bf16.msra.mxu0 %v3487_v51 }
 0x1d0   : > { %v1403_v4 = vadd.f32 %v3024_v0, %v2912_v62  ;;  %v2914_v5 = vpop.f32.mrf.mxu0  ;;  %3209 = vmatprep.subr.bf16.mxu0 %v3697_v50 }
 0x1d1   : > { %v3026_v6 = vpop.f32.mrf.mxu1  ;;  %v2915_v10 = vadd.f32 %v2914_v5, %v2913_v1  ;;  %v3495_v5 = vld [vmem:[%s4254_s8 + $0x30] sm:$0xff]  }
 0x1d2   : > { %v2916_v7 = vpop.f32.mrf.mxu0  ;;  %v1490_v8 = vpack.c.bf16 %v1403_v4, %v1400_v3  ;;  %v3027_v11 = vadd.f32 %v3026_v6, %v3025_v2  ;;  %v3494_v3 = vld [vmem:[%s4254_s8 + $0x38] sm:$0xff]  }
 0x1d3   : > { %v3028_v9 = vpop.f32.mrf.mxu1  ;;  %3210 = vmatpush3.bf16.msra.mxu0 %v3488_v52  ;;  %3226 = vmatpush3.bf16.msra.mxu1 %v3494_v3 }
 0x1d4   : > { %3149 = vmatprep.mubr.bf16.mxu0 %v1490_v8  ;;  %v2917_v12 = vpop.f32.mrf.mxu0  ;;  %v1408_v18 = vadd.f32 %v3027_v11, %v2915_v10  ;;  %3211 = vmatprep.subr.bf16.mxu0 %v3697_v50  ;;  %v3496_v8 = vld [vmem:[%s4254_s8 + $0x28] sm:$0xff]  }
 0x1d5   : > { %v2918_v13 = vadd.f32 %v2917_v12, %v2916_v7  ;;  %v3029_v14 = vpop.f32.mrf.mxu1  ;;  %3227 = vmatprep.subr.bf16.mxu1 %v3697_v50  ;;  %v3497_v12 = vld [vmem:[%s4254_s8 + $0x20] sm:$0xff]  }
 0x1d6   : > { %v3030_v15 = vadd.f32 %v3029_v14, %v3028_v9  ;;  %v2919_v16 = vpop.f32.mrf.mxu0 }
 0x1d7   : > { %v3031_v17 = vpop.f32.mrf.mxu1  ;;  %3212 = vmatpush3.bf16.msra.mxu0 %v3489_v53  ;;  %3228 = vmatpush3.bf16.msra.mxu1 %v3495_v5 }
 0x1d8   : > { %v1411_v19 = vadd.f32 %v3030_v15, %v2918_v13  ;;  %v2920_v20 = vpop.f32.mrf.mxu0  ;;  %3213 = vmatprep.subr.bf16.mxu0 %v3697_v50  ;;  %3229 = vmatprep.subr.bf16.mxu1 %v3697_v50  ;;  %v3498_v15 = vld [vmem:[%s4254_s8 + $0x18] sm:$0xff]  }
 0x1d9   : > { %v3032_v21 = vpop.f32.mrf.mxu1  ;;  %v2921_v25 = vadd.f32 %v2920_v20, %v2919_v16 }
 0x1da   : > { %v2922_v22 = vpop.f32.mrf.mxu0  ;;  %v1491_v23 = vpack.c.bf16 %v1411_v19, %v1408_v18  ;;  %v3033_v26 = vadd.f32 %v3032_v21, %v3031_v17  ;;  %v3499_v19 = vld [vmem:[%s4254_s8 + $0x10] sm:$0xff]  }
 0x1db   : > { %v3034_v24 = vpop.f32.mrf.mxu1  ;;  %3214 = vmatpush3.bf16.msra.mxu0 %v3490_v55  ;;  %3230 = vmatpush3.bf16.msra.mxu1 %v3496_v8 }
 0x1dc   : > { %3150 = vmatmul.mubr.bf16.gmra.mxu0 %v1491_v23  ;;  %v2923_v27 = vpop.f32.mrf.mxu0  ;;  %v1416_v33 = vadd.f32 %v3033_v26, %v2921_v25  ;;  %3215 = vmatprep.subr.bf16.mxu0 %v3697_v50 }
 0x1dd   : > { %v2924_v28 = vadd.f32 %v2923_v27, %v2922_v22  ;;  %v3035_v29 = vpop.f32.mrf.mxu1  ;;  %3231 = vmatprep.subr.bf16.mxu1 %v3697_v50  ;;  %v3500_v22 = vld [vmem:[%s4254_s8 + $0x8] sm:$0xff]   ;;  %v4126_v27 = vld [vmem:[%s4251_s5] ss:$0 sm:$0xff] }
 0x1de   : > { %v3036_v30 = vadd.f32 %v3035_v29, %v3034_v24  ;;  %v2925_v31 = vpop.f32.mrf.mxu0 }
 0x1df   : > { %v3037_v32 = vpop.f32.mrf.mxu1  ;;  %3216 = vmatpush3.bf16.msra.mxu0 %v3491_v57  ;;  %3232 = vmatpush3.bf16.msra.mxu1 %v3497_v12 }
 0x1e0   : > { %v1419_v34 = vadd.f32 %v3036_v30, %v2924_v28  ;;  %v2926_v35 = vpop.f32.mrf.mxu0  ;;  %3217 = vmatprep.subr.bf16.mxu0 %v3697_v50  ;;  %3233 = vmatprep.subr.bf16.mxu1 %v3697_v50 }
 0x1e1   : > { %v3038_v36 = vpop.f32.mrf.mxu1  ;;  %v2927_v40 = vadd.f32 %v2926_v35, %v2925_v31 }
 0x1e2   : > { %v2928_v37 = vpop.f32.mrf.mxu0  ;;  %v1492_v38 = vpack.c.bf16 %v1419_v34, %v1416_v33  ;;  %v3039_v41 = vadd.f32 %v3038_v36, %v3037_v32 }
 0x1e3   : > { %v3040_v39 = vpop.f32.mrf.mxu1  ;;  %3218 = vmatpush3.bf16.msra.mxu0 %v3492_v60  ;;  %3234 = vmatpush3.bf16.msra.mxu1 %v3498_v15 }
 0x1e4   : > { %3153 = vmatprep.mubr.bf16.mxu0 %v1492_v38  ;;  %v2929_v42 = vpop.f32.mrf.mxu0  ;;  %v1424_v46 = vadd.f32 %v3039_v41, %v2927_v40  ;;  %3219 = vmatprep.subr.bf16.mxu0 %v3697_v50 }
 0x1e5   : > { %v2930_v43 = vadd.f32 %v2929_v42, %v2928_v37  ;;  %v3041_v44 = vpop.f32.mrf.mxu1  ;;  %3235 = vmatprep.subr.bf16.mxu1 %v3697_v50 }
 0x1e6   : > { %v3042_v45 = vadd.f32 %v3041_v44, %v3040_v39 }
 0x1e7   : > { %v3175_v54 = vpop.f32.mrf.mxu1  ;;  %3220 = vmatpush3.bf16.msra.mxu0 %v3493_v63  ;;  %3236 = vmatpush3.bf16.msra.mxu1 %v3499_v19 }
 0x1e8   : > { %v1427_v47 = vadd.f32 %v3042_v45, %v2930_v43  ;;  %3237 = vmatprep.subr.bf16.mxu1 %v3697_v50 }
 0x1e9   : > { %v4065_v56 = vpop.f32.mrf.mxu1 }
 0x1ea   : > { %v1493_v48 = vpack.c.bf16 %v1427_v47, %v1424_v46 }
 0x1eb   : > { %v3176_v59 = vpop.f32.mrf.mxu1  ;;  %3238 = vmatpush3.bf16.msra.mxu1 %v3500_v22 }
 0x1ec   : > { %3154 = vmatmul.mubr.bf16.gmra.mxu0 %v1493_v48  ;;  %3239 = vmatprep.subr.bf16.mxu1 %v3697_v50 }
 0x1ed   : > { %v1900_v62 = vpop.f32.mrf.mxu1  ;;  %3221 = vmatprep.mubr.msk.bf16.mxu0 %vm3698_vm0, %v3697_v50 }
 0x1ef   : > { %v4069_v0 = vpop.f32.mrf.mxu1 }
 0x1f1   : > { %v4074_v2 = vpop.f32.mrf.mxu1 }
 0x1f3   : > { %v4084_v7 = vpop.f32.mrf.mxu1 }
 0x1f5   : > { %v1916_v10 = vpop.f32.mrf.mxu1 }
 0x1f7   : > { %v4091_v11 = vpop.f32.mrf.mxu1 }
 0x1f9   : > { %v4097_v14 = vpop.f32.mrf.mxu1 }
 0x1fb   : > { %v4105_v18 = vpop.f32.mrf.mxu1 }
 0x1fd   : > { %v4113_v21 = vpop.f32.mrf.mxu1 }
 0x1ff   : > { %v4118_v23 = vpop.f32.mrf.mxu1 }
 0x201   : > { %v4128_v28 = vpop.f32.mrf.mxu1 }
 0x203   : > { %v4136_v35 = vpop.f32.mrf.mxu1 }
 0x205   : > { %v4142_v41 = vpop.f32.mrf.mxu1 }
 0x207   : > { %v3191_v44 = vpop.f32.mrf.mxu1 }
 0x209   : > { %v1961_v49 = vpop.f32.mrf.mxu1 }
 0x23c   : > { %v3127_v58 = vpop.f32.mrf.mxu0 }
 0x23d   : > { %v1906_v26 = vadd.f32 %v3175_v54, %v3127_v58  ;;  %v3192_v54 = vpop.f32.mrf.mxu1 }
 0x23e   : > { %v1592_v61 = vpop.f32.mrf.mxu0 }
 0x23f   : > { %v2033_v32 = vadd.f32 %v4126_v27, %v1906_v26  ;;  %v1898_v33 = vadd.f32 %v4065_v56, %v1592_v61 }
 0x240   : > { %v3128_v1 = vpop.f32.mrf.mxu0 }
 0x241   : > { %v1909_v24 = vadd.f32 %v3176_v59, %v3128_v1  ;;  %v2065_v38 = vmax.f32 %v2033_v32, 0.0  ;;  %v2031_v39 = vadd.f32 %v4126_v27, %v1898_v33  ;;  %v1964_v59 = vpop.f32.mrf.mxu1 }
 0x242   : > { %v1595_v4 = vpop.f32.mrf.mxu0 }
 0x243   : > { %v2034_v29 = vadd.f32 %v4126_v27, %v1909_v24  ;;  %v1901_v30 = vadd.f32 %v1900_v62, %v1595_v4  ;;  %v2063_v45 = vmax.f32 %v2031_v39, 0.0  ;;  %v3195_v62 = vpop.f32.mrf.mxu1 }
 0x245   : > { %v2066_v36 = vmax.f32 %v2034_v29, 0.0  ;;  %v2032_v37 = vadd.f32 %v4126_v27, %v1901_v30 }
 0x247   : > { %v2102_v42 = vadd.f32 %v2066_v36, %v2065_v38  ;;  %v2064_v43 = vmax.f32 %v2032_v37, 0.0 }
 0x249   : > { %v2103_v47 = vrot.slane %v2102_v42, 4  ;;  %v2095_v48 = vadd.f32 %v2064_v43, %v2063_v45 }
 0x24b   : > { %v2104_v51 = vadd.f32 %v2103_v47, %v2102_v42  ;;  %v2096_v52 = vrot.slane %v2095_v48, 4 }
 0x24c   : > { %v4082_v6 = vpop.f32.mrf.mxu0 }
 0x24d   : > { %v2105_v55 = vrot.slane %v2104_v51, 2  ;;  %v2097_v56 = vadd.f32 %v2096_v52, %v2095_v48  ;;  %v1922_v4 = vadd.f32 %v4069_v0, %v4082_v6 }
 0x24e   : > { %v1608_v9 = vpop.f32.mrf.mxu0 }
 0x24f   : > { %v1914_v60 = vadd.f32 %v4074_v2, %v1608_v9  ;;  %v2106_v63 = vadd.f32 %v2105_v55, %v2104_v51  ;;  %v2098_v1 = vrot.slane %v2097_v56, 2  ;;  %v2037_v2 = vadd.f32 %v4126_v27, %v1922_v4 }
 0x250   : > { %v3132_v13 = vpop.f32.mrf.mxu0 }
 0x251   : > { %v1925_v61 = vadd.f32 %v4084_v7, %v3132_v13  ;;  %v2035_v8 = vadd.f32 %v4126_v27, %v1914_v60  ;;  %v2107_v15 = vrot.slane %v2106_v63, 1  ;;  %v2069_v0 = vmax.f32 %v2037_v2, 0.0 }
 0x252   : > { %v1611_v16 = vpop.f32.mrf.mxu0 }
 0x253   : > { %v1917_v57 = vadd.f32 %v1916_v10, %v1611_v16  ;;  %v2038_v12 = vadd.f32 %v4126_v27, %v1925_v61  ;;  %v1977_v10 = vpop.f32.mrf.mxu1  ;;  %v2099_v16 = vadd.f32 %v2098_v1, %v2097_v56  ;;  %v2067_v9 = vmax.f32 %v2035_v8, 0.0 }
 0x254   : > { %v2108_v26 = vadd.f32 %v2107_v15, %v2106_v63 }
 0x255   : > { %v2036_v3 = vadd.f32 %v4126_v27, %v1917_v57  ;;  %v2070_v13 = vmax.f32 %v2038_v12, 0.0  ;;  %v3196_v24 = vpop.f32.mrf.mxu1  ;;  %v2100_v29 = vrot.slane %v2099_v16, 1 }
 0x256   : > { %v4156_v39 = vmul.f32 0.0625, %v2108_v26 }
 0x257   : > { %v2068_v19 = vmax.f32 %v2036_v3, 0.0  ;;  %v2116_v32 = vadd.f32 %v2070_v13, %v2069_v0  ;;  %v1980_v38 = vpop.f32.mrf.mxu1  ;;  %v2101_v42 = vadd.f32 %v2100_v29, %v2099_v16 }
 0x258   : > { %v2225_v61 = vpack.c.bf16 %v4156_v39, %v4156_v39 }
 0x259   : > { %v2109_v30 = vadd.f32 %v2068_v19, %v2067_v9  ;;  %v2117_v57 = vrot.slane %v2116_v32, 4  ;;  %v3199_v60 = vpop.f32.mrf.mxu1  ;;  %v4165_v63 = vmul.f32 0.0625, %v2101_v42 }
 0x25b   : > { %v2110_v43 = vrot.slane %v2109_v30, 4  ;;  %v4177_v4 = vadd.f32 %v2117_v57, %v2116_v32 }
 0x25c   : > { %v4103_v17 = vpop.f32.mrf.mxu0 }
 0x25d   : > { %v1938_v16 = vadd.f32 %v4091_v11, %v4103_v17  ;;  %v2119_v26 = vrot.slane %v4177_v4, 2 }
 0x25e   : > { %v4111_v20 = vpop.f32.mrf.mxu0 }
 0x25f   : > { %v1930_v52 = vadd.f32 %v4097_v14, %v4111_v20 }
 0x260   : > { %v4121_v25 = vpop.f32.mrf.mxu0 }
 0x262   : > { %v1627_v31 = vpop.f32.mrf.mxu0 }
 0x263   : > { %v1933_v45 = vadd.f32 %v4113_v21, %v1627_v31  ;;  %v2111_v21 = vadd.f32 %v2110_v43, %v2109_v30 }
 0x265   : > { %v2112_v15 = vrot.slane %v2111_v21, 2 }
 0x26c   : > { %v4134_v34 = vpop.f32.mrf.mxu0 }
 0x26e   : > { %v4140_v40 = vpop.f32.mrf.mxu0 }
 0x26f   : > { %v1946_v19 = vadd.f32 %v4128_v28, %v4140_v40 }
 0x270   : > { %v4144_v46 = vpop.f32.mrf.mxu0 }
 0x271   : > { %v2043_v29 = vadd.f32 %v4126_v27, %v1946_v19 }
 0x272   : > { %v4146_v50 = vpop.f32.mrf.mxu0 }
 0x273   : > { %v1949_v1 = vadd.f32 %v4142_v41, %v4146_v50 }
 0x275   : > { %v2044_v13 = vadd.f32 %v4126_v27, %v1949_v1 }
 0x27c   : > { %v3143_v53 = vpop.f32.mrf.mxu0 }
 0x27d   : > { %v1970_v47 = vadd.f32 %v3191_v44, %v3143_v53  ;;  %v2040_v44 = vadd.f32 %v4126_v27, %v1933_v45  ;;  %v2039_v53 = vadd.f32 %v4126_v27, %v1930_v52 }
 0x27e   : > { %v1656_v58 = vpop.f32.mrf.mxu0 }
 0x27f   : > { %v1962_v48 = vadd.f32 %v1961_v49, %v1656_v58  ;;  %v2049_v14 = vadd.f32 %v4126_v27, %v1970_v47  ;;  %v1941_v58 = vadd.f32 %v4105_v18, %v4121_v25  ;;  %v2072_v18 = vmax.f32 %v2040_v44, 0.0 }
 0x280   : > { %v3144_v5 = vpop.f32.mrf.mxu0  ;;  %v2071_v50 = vmax.f32 %v2039_v53, 0.0 }
 0x281   : > { %v1973_v33 = vadd.f32 %v3192_v54, %v3144_v5  ;;  %v2047_v20 = vadd.f32 %v4126_v27, %v1962_v48  ;;  %v2081_v25 = vmax.f32 %v2049_v14, 0.0  ;;  %v2042_v9 = vadd.f32 %v4126_v27, %v1941_v58 }
 0x282   : > { %v1659_v7 = vpop.f32.mrf.mxu0  ;;  %v2123_v32 = vadd.f32 %v2072_v18, %v2071_v50  ;;  %v2120_v50 = vadd.f32 %v2119_v26, %v4177_v4 }
 0x283   : > { %v1965_v36 = vadd.f32 %v1964_v59, %v1659_v7  ;;  %v2050_v54 = vadd.f32 %v4126_v27, %v1973_v33  ;;  %v2079_v7 = vmax.f32 %v2047_v20, 0.0  ;;  %v1954_v33 = vadd.f32 %v4118_v23, %v4134_v34 }
 0x284   : > { %v2124_v23 = vrot.slane %v2123_v32, 4  ;;  %v2121_v4 = vrot.slane %v2120_v50, 1 }
 0x285   : > { %v2048_v59 = vadd.f32 %v4126_v27, %v1965_v36  ;;  %v2082_v5 = vmax.f32 %v2050_v54, 0.0  ;;  %v2045_v34 = vadd.f32 %v4126_v27, %v1954_v33 }
 0x287   : > { %v2080_v8 = vmax.f32 %v2048_v59, 0.0 }
 0x289   : > { %v2151_v11 = vadd.f32 %v2080_v8, %v2079_v7 }
 0x28b   : > { %v2152_v47 = vrot.slane %v2151_v11, 4 }
 0x28c   : > { %v3147_v22 = vpop.f32.mrf.mxu0 }
 0x28d   : > { %v1986_v12 = vadd.f32 %v3195_v62, %v3147_v22  ;;  %v1957_v22 = vadd.f32 %v4136_v35, %v4144_v46  ;;  %v2113_v46 = vadd.f32 %v2112_v15, %v2111_v21  ;;  %v2153_v1 = vadd.f32 %v2152_v47, %v2151_v11 }
 0x28e   : > { %v1672_v6 = vpop.f32.mrf.mxu0  ;;  %v2125_v15 = vadd.f32 %v2124_v23, %v2123_v32 }
 0x28f   : > { %v1978_v55 = vadd.f32 %v1977_v10, %v1672_v6  ;;  %v1993_v10 = vpop.f32.mrf.mxu1  ;;  %v2053_v17 = vadd.f32 %v4126_v27, %v1986_v12  ;;  %v2041_v6 = vadd.f32 %v4126_v27, %v1938_v16  ;;  %v2046_v43 = vadd.f32 %v4126_v27, %v1957_v22 }
 0x290   : > { %v3148_v37 = vpop.f32.mrf.mxu0  ;;  %v2077_v16 = vmax.f32 %v2045_v34, 0.0  ;;  %v2114_v22 = vrot.slane %v2113_v46, 1 }
 0x291   : > { %v1989_v49 = vadd.f32 %v3196_v24, %v3148_v37  ;;  %v2051_v3 = vadd.f32 %v4126_v27, %v1978_v55  ;;  %v2158_v24 = vadd.f32 %v2082_v5, %v2081_v25  ;;  %v3200_v40 = vpop.f32.mrf.mxu1  ;;  %v2074_v37 = vmax.f32 %v2042_v9, 0.0 }
 0x292   : > { %v1675_v51 = vpop.f32.mrf.mxu0  ;;  %v2085_v48 = vmax.f32 %v2053_v17, 0.0  ;;  %v2075_v55 = vmax.f32 %v2043_v29, 0.0  ;;  %v2073_v59 = vmax.f32 %v2041_v6, 0.0  ;;  %v2078_v53 = vmax.f32 %v2046_v43, 0.0 }
 0x293   : > { %v1981_v56 = vadd.f32 %v1980_v38, %v1675_v51  ;;  %v2054_v41 = vadd.f32 %v4126_v27, %v1989_v49  ;;  %v2083_v62 = vmax.f32 %v2051_v3, 0.0  ;;  %v2076_v38 = vmax.f32 %v2044_v13, 0.0  ;;  %v1996_v52 = vpop.f32.mrf.mxu1 }
 0x294   : > { %v2159_v45 = vrot.slane %v2158_v24, 4  ;;  %v2130_v49 = vadd.f32 %v2074_v37, %v2073_v59  ;;  %v2144_v13 = vadd.f32 %v2078_v53, %v2077_v16  ;;  %v2115_v37 = vadd.f32 %v2114_v22, %v2113_v46 }
 0x295   : > { %v2052_v31 = vadd.f32 %v4126_v27, %v1981_v56  ;;  %v2086_v36 = vmax.f32 %v2054_v41, 0.0 }
 0x296   : > { %v2160_v58 = vadd.f32 %v2159_v45, %v2158_v24  ;;  %v2131_v9 = vrot.slane %v2130_v49, 4  ;;  %v2145_v33 = vrot.slane %v2144_v13, 4 }
 0x297   : > { %v2084_v2 = vmax.f32 %v2052_v31, 0.0  ;;  %v2137_v31 = vadd.f32 %v2076_v38, %v2075_v55 }
 0x298   : > { %v2161_v24 = vrot.slane %v2160_v58, 2  ;;  %v2132_v26 = vadd.f32 %v2131_v9, %v2130_v49  ;;  %v2146_v23 = vadd.f32 %v2145_v33, %v2144_v13 }
 0x299   : > { %v2165_v30 = vadd.f32 %v2084_v2, %v2083_v62  ;;  %v3203_v2 = vpop.f32.mrf.mxu1  ;;  %v2138_v18 = vrot.slane %v2137_v31, 4  ;;  %v2154_v62 = vrot.slane %v2153_v1, 2 }
 0x29a   : > { %v2162_v38 = vadd.f32 %v2161_v24, %v2160_v58  ;;  %v2133_v59 = vrot.slane %v2132_v26, 2 }
 0x29b   : > { %v2166_v56 = vrot.slane %v2165_v30, 4  ;;  %v2009_v29 = vpop.f32.mrf.mxu1  ;;  %v2139_v6 = vadd.f32 %v2138_v18, %v2137_v31 }
 0x29c   : > { %v3151_v28 = vpop.f32.mrf.mxu0 }
 0x29d   : > { %v2002_v0 = vadd.f32 %v3199_v60, %v3151_v28  ;;  %v2172_v60 = vadd.f32 %v2086_v36, %v2085_v48  ;;  %v2167_v3 = vadd.f32 %v2166_v56, %v2165_v30  ;;  %v2280_v30 = vunpack.c.l.b16 %v2225_v61 }
 0x29e   : > { %v1688_v35 = vpop.f32.mrf.mxu0  ;;  %v2155_v36 = vadd.f32 %v2154_v62, %v2153_v1  ;;  %v2140_v55 = vrot.slane %v2139_v6, 2 }
 0x29f   : > { %v1994_v42 = vadd.f32 %v1993_v10, %v1688_v35  ;;  %v2057_v57 = vadd.f32 %v4126_v27, %v2002_v0  ;;  %v2224_v10 = vpack.c.bf16 %v4165_v63, %v4165_v63  ;;  %v2173_v19 = vrot.slane %v2172_v60, 4 }
 0x2a0   : > { %v3152_v51 = vpop.f32.mrf.mxu0  ;;  %v2168_v11 = vrot.slane %v2167_v3, 2  ;;  %v2126_v0 = vrot.slane %v2125_v15, 2  ;;  %v2156_v34 = vrot.slane %v2155_v36, 1 }
 0x2a1   : > { %v2005_v54 = vadd.f32 %v3200_v40, %v3152_v51  ;;  %v2055_v44 = vadd.f32 %v4126_v27, %v1994_v42  ;;  %v2089_v5 = vmax.f32 %v2057_v57, 0.0  ;;  %v2279_v28 = vunpack.c.l.b16 %v2224_v10  ;;  %v3204_v51 = vpop.f32.mrf.mxu1 }
 0x2a2   : > { %v1691_v21 = vpop.f32.mrf.mxu0  ;;  %v2174_v63 = vadd.f32 %v2173_v19, %v2172_v60  ;;  %v2169_v42 = vadd.f32 %v2168_v11, %v2167_v3  ;;  %v2210_v60 = vmul.f32 0.0625, %v2115_v37  ;;  %v2134_v10 = vadd.f32 %v2133_v59, %v2132_v26 }
 0x2a3   : > { %v2058_v14 = vadd.f32 %v4126_v27, %v2005_v54  ;;  %v1997_v20 = vadd.f32 %v1996_v52, %v1691_v21  ;;  %v2087_v25 = vmax.f32 %v2055_v44, 0.0  ;;  %v4207_v45 = vsel %vm2295_vm1, %v2280_v30, %v2279_v28  ;;  %v2012_v53 = vpop.f32.mrf.mxu1 }
 0x2a4   : > { %v2175_v47 = vrot.slane %v2174_v63, 2  ;;  %v2127_v52 = vadd.f32 %v2126_v0, %v2125_v15  ;;  %v2122_v54 = vadd.f32 %v2121_v4, %v2120_v50  ;;  %v2163_v21 = vrot.slane %v2162_v38, 1 }
 0x2a5   : > { %v2090_v8 = vmax.f32 %v2058_v14, 0.0  ;;  %v2056_v12 = vadd.f32 %v4126_v27, %v1997_v20  ;;  %v2170_v31 = vrot.slane %v2169_v42, 1  ;;  %v2147_v15 = vrot.slane %v2146_v23, 2 }
 0x2a6   : > { %v2176_v14 = vadd.f32 %v2175_v47, %v2174_v63  ;;  %v2128_v3 = vrot.slane %v2127_v52, 1  ;;  %v2157_v16 = vadd.f32 %v2156_v34, %v2155_v36  ;;  %v2226_v33 = vpack.c.bf16 %v2210_v60, %v2210_v60 }
 0x2a7   : > { %v2186_v7 = vadd.f32 %v2090_v8, %v2089_v5  ;;  %v2088_v41 = vmax.f32 %v2056_v12, 0.0  ;;  %v2141_v5 = vadd.f32 %v2140_v55, %v2139_v6  ;;  %v2171_v18 = vadd.f32 %v2170_v31, %v2169_v42 }
 0x2a8   : > { %v2129_v62 = vadd.f32 %v2128_v3, %v2127_v52  ;;  %v2148_v28 = vadd.f32 %v2147_v15, %v2146_v23  ;;  %v2216_v63 = vmul.f32 0.0625, %v2157_v16 }
 0x2a9   : > { %v2179_v17 = vadd.f32 %v2088_v41, %v2087_v25  ;;  %v2187_v40 = vrot.slane %v2186_v7, 4  ;;  %v2177_v41 = vrot.slane %v2176_v14, 1  ;;  %v2142_v22 = vrot.slane %v2141_v5, 1 }
 0x2aa   : > { %v2218_v30 = vmul.f32 0.0625, %v2171_v18  ;;  %v2212_v36 = vmul.f32 0.0625, %v2129_v62  ;;  %v2149_v42 = vrot.slane %v2148_v28, 1 }
 0x2ab   : > { %v2180_v32 = vrot.slane %v2179_v17, 4  ;;  %v2188_v48 = vadd.f32 %v2187_v40, %v2186_v7  ;;  %v2178_v4 = vadd.f32 %v2177_v41, %v2176_v14 }
 0x2ac   : > { %v3155_v35 = vpop.f32.mrf.mxu0  ;;  %v2228_v59 = vpack.c.bf16 %v2212_v36, %v2212_v36  ;;  %v2150_v60 = vadd.f32 %v2149_v42, %v2148_v28 }
 0x2ad   : > { %v2181_v43 = vadd.f32 %v2180_v32, %v2179_v17  ;;  %v2018_v39 = vadd.f32 %v3203_v2, %v3155_v35  ;;  %v2189_v20 = vrot.slane %v2188_v48, 2  ;;  %v2164_v2 = vadd.f32 %v2163_v21, %v2162_v38 }
 0x2ae   : > { %v1704_v61 = vpop.f32.mrf.mxu0  ;;  %v2135_v17 = vrot.slane %v2134_v10, 1  ;;  %v2143_v35 = vadd.f32 %v2142_v22, %v2141_v5  ;;  %v2219_v55 = vmul.f32 0.0625, %v2178_v4  ;;  %v2215_v16 = vmul.f32 0.0625, %v2150_v60 }
 0x2af   : > { %v2182_v56 = vrot.slane %v2181_v43, 2  ;;  %v2010_v57 = vadd.f32 %v2009_v29, %v1704_v61  ;;  %v2061_v49 = vadd.f32 %v4126_v27, %v2018_v39  ;;  %v2190_v50 = vadd.f32 %v2189_v20, %v2188_v48 }
 0x2b0   : > { %v3156_v46 = vpop.f32.mrf.mxu0  ;;  %v2211_v29 = vmul.f32 0.0625, %v2122_v54  ;;  %v2217_v32 = vmul.f32 0.0625, %v2164_v2  ;;  %v2136_v38 = vadd.f32 %v2135_v17, %v2134_v10  ;;  %v2281_v54 = vunpack.c.l.b16 %v2226_v33 }
 0x2b1   : > { %v2183_v44 = vadd.f32 %v2182_v56, %v2181_v43  ;;  %v2021_v58 = vadd.f32 %v3204_v51, %v3156_v46  ;;  %v2059_v8 = vadd.f32 %v4126_v27, %v2010_v57  ;;  %v2093_v9 = vmax.f32 %v2061_v49, 0.0 }
 0x2b2   : > { %v1707_v1 = vpop.f32.mrf.mxu0  ;;  %v2232_v43 = vpack.c.bf16 %v2216_v63, %v2216_v63  ;;  %v2227_v48 = vpack.c.bf16 %v2211_v29, %v2211_v29  ;;  %v2234_v51 = vpack.c.bf16 %v2218_v30, %v2218_v30  ;;  %v2233_v52 = vpack.c.bf16 %v2217_v32, %v2217_v32 }
 0x2b3   : > { %v2013_v12 = vadd.f32 %v2012_v53, %v1707_v1  ;;  %v2062_v19 = vadd.f32 %v4126_v27, %v2021_v58  ;;  %v2184_v25 = vrot.slane %v2183_v44, 1  ;;  %v2091_v24 = vmax.f32 %v2059_v8, 0.0 }
 0x2b4   : > { %v2214_v23 = vmul.f32 0.0625, %v2143_v35  ;;  %v2213_v46 = vmul.f32 0.0625, %v2136_v38  ;;  %v2287_v21 = vunpack.c.l.b16 %v2232_v43  ;;  %v2289_v14 = vunpack.c.l.b16 %v2234_v51  ;;  %v2796_v38 = vld [vmem:[%s4253_s7] ss:$0 sm:$0xff] }
 0x2b5   : > { %v2060_v7 = vadd.f32 %v4126_v27, %v2013_v12  ;;  %v2094_v13 = vmax.f32 %v2062_v19, 0.0  ;;  %v2185_v0 = vadd.f32 %v2184_v25, %v2183_v44  ;;  %v2191_v27 = vrot.slane %v2190_v50, 1 }
 0x2b6   : > { %v2282_v44 = vunpack.c.l.b16 %v2227_v48  ;;  %v2288_v53 = vunpack.c.l.b16 %v2233_v52  ;;  %v2235_v58 = vpack.c.bf16 %v2219_v55, %v2219_v55  ;;  %v2298_v5 = vsel %vm2297_vm2, %v2281_v54, %v4207_v45  ;;  %v2805_v54 = vld [vmem:[#allocation2] ss:$0 sm:$0xff] }
 0x2b7   : > { %v2092_v11 = vmax.f32 %v2060_v7, 0.0  ;;  %v2200_v40 = vadd.f32 %v2094_v13, %v2093_v9  ;;  %v2220_v39 = vmul.f32 0.0625, %v2185_v0  ;;  %v2192_v56 = vadd.f32 %v2191_v27, %v2190_v50 }
 0x2b8   : > { %v2283_v8 = vunpack.c.l.b16 %v2228_v59  ;;  %v2230_v12 = vpack.c.bf16 %v2214_v23, %v2214_v23  ;;  %v2229_v15 = vpack.c.bf16 %v2213_v46, %v2213_v46  ;;  %v2309_v19 = vsel %vm2295_vm1, %v2288_v53, %v2287_v21 }
 0x2b9   : > { %v2193_v6 = vadd.f32 %v2092_v11, %v2091_v24  ;;  %v2201_v26 = vrot.slane %v2200_v40, 4  ;;  %v2236_v20 = vpack.c.bf16 %v2220_v39, %v2220_v39  ;;  %v2221_v1 = vmul.f32 0.0625, %v2192_v56 }
 0x2ba   : > { %v2310_v18 = vsel %vm2297_vm2, %v2289_v14, %v2309_v19  ;;  %v2300_v41 = vsel %vm2299_vm3, %v2282_v44, %v2298_v5  ;;  %v2290_v50 = vunpack.c.l.b16 %v2235_v58  ;;  %v2285_v62 = vunpack.c.l.b16 %v2230_v12 }
 0x2bb   : > { %v2194_v37 = vrot.slane %v2193_v6, 4  ;;  %v2202_v47 = vadd.f32 %v2201_v26, %v2200_v40  ;;  %v2291_v25 = vunpack.c.l.b16 %v2236_v20  ;;  %v2237_v9 = vpack.c.bf16 %v2221_v1, %v2221_v1 }
 0x2bc   : > { %v2302_v45 = vsel %vm2301_vm4, %v2283_v8, %v2300_v41  ;;  %v2284_v24 = vunpack.c.l.b16 %v2229_v15  ;;  %v2231_v11 = vpack.c.bf16 %v2215_v16, %v2215_v16  ;;  %v2311_v17 = vsel %vm2299_vm3, %v2290_v50, %v2310_v18 }
 0x2bd   : > { %v2195_v61 = vadd.f32 %v2194_v37, %v2193_v6  ;;  %v2203_v57 = vrot.slane %v2202_v47, 2  ;;  %v2312_v63 = vsel %vm2301_vm4, %v2291_v25, %v2311_v17  ;;  %v2292_v29 = vunpack.c.l.b16 %v2237_v9  ;;  %v3501_v37 = vld [vmem:[%s4254_s8] sm:$0xff]  }
 0x2be   : > { %v2304_v30 = vsel %vm2303_vm5, %v2284_v24, %v2302_v45  ;;  %v2286_v32 = vunpack.c.l.b16 %v2231_v11  ;;  %3240 = vmatpush3.bf16.msra.mxu1 %v3501_v37 }
 0x2bf   : > { %v2196_v34 = vrot.slane %v2195_v61, 2  ;;  %v2204_v31 = vadd.f32 %v2203_v57, %v2202_v47  ;;  %v2306_v6 = vsel %vm2305_vm6, %v2285_v62, %v2304_v30  ;;  %v2313_v27 = vsel %vm2303_vm5, %v2292_v29, %v2312_v63 }
 0x2c0   : > { %v2308_v33 = vsel %vm2307_vm7, %v2286_v32, %v2306_v6 }
 0x2c1   : > { %v2197_v49 = vadd.f32 %v2196_v34, %v2195_v61  ;;  %v2205_v3 = vrot.slane %v2204_v31, 1 }
 0x2c3   : > { %v2198_v10 = vrot.slane %v2197_v49, 1  ;;  %v2206_v2 = vadd.f32 %v2205_v3, %v2204_v31 }
 0x2c5   : > { %v2199_v7 = vadd.f32 %v2198_v10, %v2197_v49  ;;  %v2223_v13 = vmul.f32 0.0625, %v2206_v2 }
 0x2c7   : > { %v2222_v22 = vmul.f32 0.0625, %v2199_v7  ;;  %v2239_v28 = vpack.c.bf16 %v2223_v13, %v2223_v13 }
 0x2c9   : > { %v2238_v40 = vpack.c.bf16 %v2222_v22, %v2222_v22  ;;  %v2294_v4 = vunpack.c.l.b16 %v2239_v28 }
 0x2cb   : > { %v2293_v0 = vunpack.c.l.b16 %v2238_v40 }
 0x2cd   : > { %v2314_v26 = vsel %vm2305_vm6, %v2293_v0, %v2313_v27 }
 0x2ce   : > { %v2315_v36 = vsel %vm2307_vm7, %v2294_v4, %v2314_v26 }
 0x2cf   : > { %v2316_v35 = vpack.c.b16 %v2315_v36, %v2308_v33 }
 0x2d1   : > { %3222 = vmatmul.mubr.bf16.vlgmr.msra.gmra.mxu0 %v2316_v35 }
 0x391   : > { %v2400_v42 = vpop.f32.mrf.mxu0 }
 0x392   : > { %v2401_v43 = vadd.f32 %v2796_v38, %v2400_v42 }
 0x393   : > { %v3223_v47 = vpop.f32.mrf.mxu0 }
 0x394   : > { %v2409_v51 = vmul.f32 0.01, %v2401_v43  ;;  %vm2407_vm8 = vcmp.gt.f32.partialorder %v2401_v43, 0.0 }
 0x395   : > { %v2403_v48 = vpop.f32.mrf.mxu0 }
 0x396   : > { %v2404_v39 = vadd.f32 %v2796_v38, %v2403_v48  ;;  %v2411_v55 = vsel %vm2407_vm8, %v2401_v43, %v2409_v51 }
 0x397   : > { %v3224_v61 = vpop.f32.mrf.mxu0 }
 0x398   : > { %vm2408_vm9 = vcmp.gt.f32.partialorder %v2404_v39, 0.0  ;;  %v2410_v52 = vmul.f32 0.01, %v2404_v39 }
 0x39a   : > { %v2412_v56 = vsel %vm2408_vm9, %v2404_v39, %v2410_v52 }
 0x39b   : > { %v2413_v57 = vpack.c.bf16 %v2412_v56, %v2411_v55 }
 0x39d   : > { %3242 = vmatmul.mubr.bf16.vlgmr.msra.gmra.mxu1 %v2413_v57 }
 0x45d   : > { %v2519_v59 = vpop.f32.mrf.mxu1 }
 0x45e   : > { %v2520_v23 = vadd.f32 %v2805_v54, %v2519_v59 }
 0x45f   : > { %v3243_v34 = vpop.f32.mrf.mxu1 }
 0x460   : > { %2527 = vst.msk [vmem:[%s465_s10] sm:$0xff] %vm2526_vm10, %v2520_v23 }
 0x461   : > { %v2522_v46 = vpop.f32.mrf.mxu1 }
 0x462   : > { %v2523_v60 = vadd.f32 %v2805_v54, %v2522_v46 }
 0x463   : > { %v3244_v21 = vpop.f32.mrf.mxu1 }
 0x464   : > { %2528 = vst.msk [vmem:[%s465_s10 + $0x8] sm:$0xff] %vm2526_vm10, %v2523_v60 }
 0x465 PF: > { %s4288_s18 = sld [smem:[#allocation16_spill]]  ;;  %s4289_s15 = smov %s3678_s16 }
 0x466   : > { %s4290_s16 = smov %s3682_s17  ;;  %s4291_s17 = smov %s3824_s12 }
 0x46b   : > { %p24_p5 = scmp.ge.s32.totalorder %s4288_s18, 4  }
 0x46d   :  { %26 = sbr.rel (!%p24_p5) target bundleno = 8 (0x8), region = 123 }
 0x472   :  { %2551 = vsyncpa [#allocation4], 1 }
 0x473   :  { %2553 = vsyncpa [#allocation4 + $0x1], 1 }
 0x474   :  { %2554 = vsyncpa [#allocation6], 1 }
 0x475   :  { %2555 = vsyncpa [#allocation10], 1 }

</bundles_post_ra>
